<compile_context>
chip_gen: v5e
topology: v5e:2x2
jax: 0.10.0
libtpu: 0.0.40
codegen_flags: <defaults>
</compile_context>

<pallas_src>
import functools

import jax
import jax.numpy as jnp
from jax.experimental import pallas as pl
from jax.experimental.pallas import tpu as pltpu


def _fused_vgg_block_kernel(p_ref, w0_ref, b0_ref, w2_ref, b2_ref, mask_ref,
                            o_ref, ys_ref, acc_ref, *, W, TH):
    """conv3x3(3->64)+ReLU+conv3x3(64->64)+ReLU for one (image, row-tile).

    p_ref    : (1, 1, Mh, 32)    bf16  im2col patches over the tile's extended
                                       conv1 grid (TH+2 rows incl. halo, W+2 cols)
    w0_ref   : (32, 64)          bf16  conv1 weights, (kh,kw,cin) packed on K (zero-padded 27->32)
    b0_ref   : (1, 64)           f32   conv1 bias
    w2_ref   : (3, 192, 64)      bf16  conv2 weights, per-kh (kw,cin) packed on K
    b2_ref   : (1, 64)           f32   conv2 bias
    mask_ref : (Mh, 1)           f32   1.0 on interior columns, 0.0 on column halo
    o_ref    : (1, 1, Mo, 64)    bf16  conv2+ReLU output (extended-grid columns,
                                       slack columns dropped by the wrapper)
    ys_ref   : (S, 64)           bf16  scratch: flat zero-haloed conv1 activation,
                                       shifted down one row so every conv2 tap is
                                       a non-negative contiguous slab offset
    acc_ref  : (Mo, 64)          f32   scratch: conv2 accumulator
    """
    Wp = W + 2
    Mh = (TH + 2) * Wp
    Mo = TH * Wp
    Cout = acc_ref.shape[-1]
    S = ys_ref.shape[0]
    t = pl.program_id(1)
    n_t = pl.num_programs(1)

    # ---- features[0] conv + features[1] ReLU: one deep-K (32) MXU matmul ----
    y1 = jnp.dot(p_ref[0, 0], w0_ref[...], preferred_element_type=jnp.float32)
    y1 = jnp.maximum(y1 + b0_ref[...], 0.0)
    # Zero the left/right halo columns of the extended grid (conv2 zero padding).
    y1 = y1 * mask_ref[...]

    # ---- Stage into the flat, zero-haloed VMEM scratch (bf16 for the MXU) ----
    ys_ref[0:1, :] = jnp.zeros((1, Cout), ys_ref.dtype)            # shift row
    ys_ref[1:Mh + 1, :] = y1.astype(ys_ref.dtype)                  # activation
    ys_ref[Mh + 1:S, :] = jnp.zeros((S - Mh - 1, Cout), ys_ref.dtype)  # slack

    @pl.when(t == 0)
    def _():  # first tile: its top halo row lies above the image -> zero it
        ys_ref[1:1 + Wp, :] = jnp.zeros((Wp, Cout), ys_ref.dtype)

    @pl.when(t == n_t - 1)
    def _():  # last tile: its bottom halo row lies below the image -> zero it
        ys_ref[1 + Mh - Wp:1 + Mh, :] = jnp.zeros((Wp, Cout), ys_ref.dtype)

    # ---- features[2] conv: 3 kw-packed (K=192) contiguous-slab matmuls ----
    # Output flat row m = h_local*Wp + ww, tap (kh, kw) reads scratch row
    # m + kh*Wp + kw (thanks to the one-row storage shift), so per kh the 3 kw
    # taps are 3 contiguous slabs, lane-concatenated into a single deep dot.
    for kh in range(3):
        base = kh * Wp
        lhs = jnp.concatenate(
            [ys_ref[base + 0:base + 0 + Mo, :],
             ys_ref[base + 1:base + 1 + Mo, :],
             ys_ref[base + 2:base + 2 + Mo, :]], axis=-1)          # (Mo, 192) bf16
        contrib = jnp.dot(lhs, w2_ref[kh], preferred_element_type=jnp.float32)
        if kh == 0:
            acc_ref[...] = contrib
        else:
            acc_ref[...] += contrib

    # ---- features[3] ReLU (with conv2 bias), bf16 writeback ----
    o_ref[0, 0] = jnp.maximum(acc_ref[...] + b2_ref[...], 0.0).astype(o_ref.dtype)


def _pick_tile_rows(H, Wp):
    """Largest divisor of H that keeps TH*Wp <= ~8K flat rows (VMEM budget for
    v7x's 64 MiB) and, for small images, yields >=2 tiles so the halo path and
    pipeline are exercised."""
    if H <= 4:
        return H
    target = min(32, max(4, 8192 // Wp), max(4, H // 2))
    th = 1
    for d in range(1, H + 1):
        if H % d == 0 and d <= target:
            th = d
    return th


def vgg_first_block(x_nchw, w0_packed, b0, w2_packed, b2):
    """x_nchw f32 (N,3,H,W) -> f32 (N,64,H,W) via the fused Pallas kernel."""
    N, Cin, H, W = x_nchw.shape
    Wp = W + 2
    TH = _pick_tile_rows(H, Wp)
    n_tiles = H // TH
    Mh = (TH + 2) * Wp
    Mo = TH * Wp
    S = ((Mh + 2 + 7) // 8) * 8
    Cout = w2_packed.shape[-1]
    Kp = w0_packed.shape[0]          # 32 (27 taps zero-padded)

    # NCHW -> NHWC (channels on lanes), bf16 operands for the MXU.
    x = jnp.transpose(x_nchw, (0, 2, 3, 1)).astype(jnp.bfloat16)
    # 2-row / 2-col zero halo: 1 for the 3x3 window + 1 for the extra halo row
    # (row) / the extended-grid column (col).
    xp = jnp.pad(x, ((0, 0), (2, 2), (2, 2), (0, 0)))

    # Per-tile im2col over the tile's extended conv1 grid (TH+2 rows, Wp cols),
    # built directly from xp in one concat/stack expression (no intermediate
    # whole-image patch tensor).
    p_tiles = jnp.concatenate(
        [jnp.stack([xp[:, t * TH + kh: t * TH + kh + TH + 2, kw:kw + Wp, :]
                    for t in range(n_tiles)], axis=1)
         for kh in range(3) for kw in range(3)],
        axis=-1).reshape(N, n_tiles, Mh, 9 * Cin)
    p_tiles = jnp.pad(p_tiles, ((0, 0), (0, 0), (0, 0), (0, Kp - 9 * Cin)))

    # Interior-column mask for the flat extended grid (constant index_map ->
    # fetched once, not per grid step).
    col = jnp.arange(Mh, dtype=jnp.int32) % Wp
    col_mask = ((col >= 1) & (col <= W)).astype(jnp.float32).reshape(Mh, 1)

    b0_2d = b0.reshape(1, Cout).astype(jnp.float32)
    b2_2d = b2.reshape(1, Cout).astype(jnp.float32)

    out_flat = pl.pallas_call(
        functools.partial(_fused_vgg_block_kernel, W=W, TH=TH),
        out_shape=jax.ShapeDtypeStruct((N, n_tiles, Mo, Cout), jnp.bfloat16),
        grid_spec=pltpu.PrefetchScalarGridSpec(
            num_scalar_prefetch=0,
            grid=(N, n_tiles),
            in_specs=[
                pl.BlockSpec((1, 1, Mh, Kp), lambda n, t: (n, t, 0, 0)),
                pl.BlockSpec((Kp, Cout), lambda n, t: (0, 0)),
                pl.BlockSpec((1, Cout), lambda n, t: (0, 0)),
                pl.BlockSpec((3, 3 * Cout, Cout), lambda n, t: (0, 0, 0)),
                pl.BlockSpec((1, Cout), lambda n, t: (0, 0)),
                pl.BlockSpec((Mh, 1), lambda n, t: (0, 0)),
            ],
            out_specs=pl.BlockSpec((1, 1, Mo, Cout), lambda n, t: (n, t, 0, 0)),
            scratch_shapes=[pltpu.VMEM((S, Cout), jnp.bfloat16),
                            pltpu.VMEM((Mo, Cout), jnp.float32)],
        ),
        compiler_params=pltpu.CompilerParams(
            dimension_semantics=("parallel", "parallel"),
            # Tile sizes above keep the per-step working set well under this
            # limit (and under v7x's 64 MiB physical VMEM).
            vmem_limit_bytes=32 * 1024 * 1024,
        ),
    )(p_tiles, w0_packed, b0_2d, w2_packed, b2_2d, col_mask)

    # Drop the 2 slack columns of the extended grid; back to NCHW f32.
    out = out_flat.reshape(N, H, Wp, Cout)[:, :, 1:W + 1, :]
    return jnp.transpose(out, (0, 3, 1, 2)).astype(jnp.float32)


class VGG19Pallas:
    """Stand-in for torchvision VGG19.features[:4] with deterministic random
    weights (PyTorch Conv2d layout: (Cout, Cin, kH, kW))."""

    def __init__(self, key):
        k0, k1, k2, k3 = jax.random.split(key, 4)
        self.w0_torch = jax.random.normal(k0, (64, 3, 3, 3), jnp.float32) * 0.1
        self.b0 = jax.random.normal(k1, (64,), jnp.float32) * 0.1
        self.w2_torch = jax.random.normal(k2, (64, 64, 3, 3), jnp.float32) * 0.05
        self.b2 = jax.random.normal(k3, (64,), jnp.float32) * 0.1

        # Kernel layouts (bf16 operands, f32 accumulation in-kernel):
        #   conv1 packed as (kh*kw*cin, cout), zero-padded K=27 -> 32,
        #   conv2 packed per kh as (kw*cin, cout) = (192, 64).
        w0p = jnp.transpose(self.w0_torch, (2, 3, 1, 0)).reshape(27, 64)
        self.w0_packed = jnp.pad(w0p, ((0, 5), (0, 0))).astype(jnp.bfloat16)
        self.w2_packed = (jnp.transpose(self.w2_torch, (2, 3, 1, 0))
                          .reshape(3, 192, 64).astype(jnp.bfloat16))

    def __call__(self, x_nchw):
        feat = vgg_first_block(x_nchw, self.w0_packed, self.b0,
                               self.w2_packed, self.b2)
        return [feat]   # feature_maps list, as in the PyTorch forward()


def _reference(x_nchw, model):
    """Plain-JAX reference mirroring the kernel's bf16-operand / f32-accum math."""
    xb = x_nchw.astype(jnp.bfloat16)
    w0 = model.w0_torch.astype(jnp.bfloat16)
    w2 = model.w2_torch.astype(jnp.bfloat16)
    y = jax.lax.conv_general_dilated(
        xb, w0, (1, 1), ((1, 1), (1, 1)),
        dimension_numbers=("NCHW", "OIHW", "NCHW"),
        preferred_element_type=jnp.float32)
    y = jnp.maximum(y + model.b0[None, :, None, None], 0.0)
    y = y.astype(jnp.bfloat16)
    y = jax.lax.conv_general_dilated(
        y, w2, (1, 1), ((1, 1), (1, 1)),
        dimension_numbers=("NCHW", "OIHW", "NCHW"),
        preferred_element_type=jnp.float32)
    y = jnp.maximum(y + model.b2[None, :, None, None], 0.0)
    return y


if __name__ == "__main__":
    key = jax.random.PRNGKey(0)
    k_in, k_params = jax.random.split(key)

    # Small VGG-consistent input: batch=2, 3 RGB channels, 16x16
    # (tiled as 2 row-tiles of 8 rows each -> grid (2, 2)).
    x = jax.random.normal(k_in, (2, 3, 16, 16), jnp.float32)

    model = VGG19Pallas(k_params)
    feature_maps = model(x)
    out = jax.block_until_ready(feature_maps[0])

    ref = jax.block_until_ready(_reference(x, model))
    # Kernel writes bf16 activations back to HBM; quantize the reference the
    # same way before comparing.
    ref_q = ref.astype(jnp.bfloat16).astype(jnp.float32)

    assert out.shape == (2, 64, 16, 16), out.shape
    max_err = float(jnp.max(jnp.abs(out - ref_q)))
    assert jnp.allclose(out, ref_q, atol=2e-2, rtol=2e-2), max_err

    print("KERNEL_OK")
</pallas_src>

<mosaic_0001>
module attributes {stable_mosaic.version = 11 : i64} {
  func.func @_fused_vgg_block_kernel(%arg0: i32, %arg1: i32, %arg2: memref<1x1x180x32xbf16, #tpu.memory_space<vmem>>, %arg3: memref<32x64xbf16, #tpu.memory_space<vmem>>, %arg4: memref<1x64xf32, #tpu.memory_space<vmem>>, %arg5: memref<3x192x64xbf16, #tpu.memory_space<vmem>>, %arg6: memref<1x64xf32, #tpu.memory_space<vmem>>, %arg7: memref<180x1xf32, #tpu.memory_space<vmem>>, %arg8: memref<1x1x144x64xbf16, #tpu.memory_space<vmem>>, %arg9: memref<184x64xbf16, #tpu.memory_space<vmem>>, %arg10: memref<144x64xf32, #tpu.memory_space<vmem>>) attributes {dimension_semantics = [#tpu.dimension_semantics<parallel>, #tpu.dimension_semantics<parallel>], iteration_bounds = array<i64: 2, 2>, scalar_prefetch = 0 : i64, scratch_operands = 2 : i64, tpu.core_type = #tpu.core_type<tc>, window_params = [{transform_indices = @transform_0, window_bounds = array<i64: 1, 1, 180, 32>}, {pipeline_mode = #tpu.pipeline_mode<synchronous>, transform_indices = @transform_1, window_bounds = array<i64: 32, 64>}, {pipeline_mode = #tpu.pipeline_mode<synchronous>, transform_indices = @transform_2, window_bounds = array<i64: 1, 64>}, {pipeline_mode = #tpu.pipeline_mode<synchronous>, transform_indices = @transform_3, window_bounds = array<i64: 3, 192, 64>}, {pipeline_mode = #tpu.pipeline_mode<synchronous>, transform_indices = @transform_4, window_bounds = array<i64: 1, 64>}, {pipeline_mode = #tpu.pipeline_mode<synchronous>, transform_indices = @transform_5, window_bounds = array<i64: 180, 1>}, {transform_indices = @transform_6, window_bounds = array<i64: 1, 1, 144, 64>}]} {
    %c0 = arith.constant 0 : index
    %c0_0 = arith.constant 0 : index
    %c0_1 = arith.constant 0 : index
    %c0_2 = arith.constant 0 : index
    %0 = vector.load %arg2[%c0, %c0_0, %c0_1, %c0_2] : memref<1x1x180x32xbf16, #tpu.memory_space<vmem>>, vector<1x1x180x32xbf16>
    %1 = vector.shape_cast %0 : vector<1x1x180x32xbf16> to vector<180x32xbf16>
    %c0_3 = arith.constant 0 : index
    %c0_4 = arith.constant 0 : index
    %2 = vector.load %arg3[%c0_3, %c0_4] : memref<32x64xbf16, #tpu.memory_space<vmem>>, vector<32x64xbf16>
    %cst = arith.constant dense<0.000000e+00> : vector<180x64xf32>
    %3 = tpu.matmul %1, %2, %cst {dimension_numbers = #tpu.dot_dimension_numbers<[1], [0], [0], [1], [0, 0, 1, 1], [], []>} : vector<180x32xbf16>, vector<32x64xbf16>, vector<180x64xf32> -> vector<180x64xf32>
    %c0_5 = arith.constant 0 : index
    %c0_6 = arith.constant 0 : index
    %4 = vector.load %arg4[%c0_5, %c0_6] : memref<1x64xf32, #tpu.memory_space<vmem>>, vector<1x64xf32>
    %5 = vector.broadcast %4 : vector<1x64xf32> to vector<180x64xf32>
    %6 = arith.addf %3, %5 : vector<180x64xf32>
    %cst_7 = arith.constant 0.000000e+00 : f32
    %7 = vector.broadcast %cst_7 : f32 to vector<180x64xf32>
    %8 = arith.maximumf %6, %7 : vector<180x64xf32>
    %c0_8 = arith.constant 0 : index
    %c0_9 = arith.constant 0 : index
    %9 = vector.load %arg7[%c0_8, %c0_9] : memref<180x1xf32, #tpu.memory_space<vmem>>, vector<180x1xf32>
    %10 = vector.broadcast %9 : vector<180x1xf32> to vector<180x64xf32>
    %11 = arith.mulf %8, %10 : vector<180x64xf32>
    %cst_10 = arith.constant 0.000000e+00 : bf16
    %12 = vector.broadcast %cst_10 : bf16 to vector<1x64xbf16>
    %c0_11 = arith.constant 0 : index
    %c0_12 = arith.constant 0 : index
    %13 = vector.load %arg9[%c0_11, %c0_12] : memref<184x64xbf16, #tpu.memory_space<vmem>>, vector<1x64xbf16>
    tpu.vector_store %arg9[%c0_11, %c0_12], %12 {strides = array<i32>} : memref<184x64xbf16, #tpu.memory_space<vmem>>, vector<1x64xbf16>,
    %14 = arith.truncf %11 : vector<180x64xf32> to vector<180x64xbf16>
    %c1 = arith.constant 1 : index
    %c0_13 = arith.constant 0 : index
    %15 = vector.load %arg9[%c1, %c0_13] : memref<184x64xbf16, #tpu.memory_space<vmem>>, vector<180x64xbf16>
    tpu.vector_store %arg9[%c1, %c0_13], %14 {strides = array<i32>} : memref<184x64xbf16, #tpu.memory_space<vmem>>, vector<180x64xbf16>,
    %cst_14 = arith.constant 0.000000e+00 : bf16
    %16 = vector.broadcast %cst_14 : bf16 to vector<3x64xbf16>
    %c181 = arith.constant 181 : index
    %c0_15 = arith.constant 0 : index
    %17 = vector.load %arg9[%c181, %c0_15] : memref<184x64xbf16, #tpu.memory_space<vmem>>, vector<3x64xbf16>
    tpu.vector_store %arg9[%c181, %c0_15], %16 {strides = array<i32>} : memref<184x64xbf16, #tpu.memory_space<vmem>>, vector<3x64xbf16>,
    %c0_i32 = arith.constant 0 : i32
    %18 = arith.cmpi eq, %arg1, %c0_i32 : i32
    %19 = arith.extui %18 : i1 to i32
    %c0_i32_16 = arith.constant 0 : i32
    %20 = arith.cmpi ne, %19, %c0_i32_16 : i32
    scf.if %20 {
      %cst_60 = arith.constant 0.000000e+00 : bf16
      %62 = vector.broadcast %cst_60 : bf16 to vector<18x64xbf16>
      %c1_61 = arith.constant 1 : index
      %c0_62 = arith.constant 0 : index
      %63 = vector.load %arg9[%c1_61, %c0_62] : memref<184x64xbf16, #tpu.memory_space<vmem>>, vector<18x64xbf16>
      tpu.vector_store %arg9[%c1_61, %c0_62], %62 {strides = array<i32>} : memref<184x64xbf16, #tpu.memory_space<vmem>>, vector<18x64xbf16>,
    } else {
    }
    %c1_i32 = arith.constant 1 : i32
    %21 = arith.cmpi eq, %arg1, %c1_i32 : i32
    %22 = arith.extui %21 : i1 to i32
    %c0_i32_17 = arith.constant 0 : i32
    %23 = arith.cmpi ne, %22, %c0_i32_17 : i32
    scf.if %23 {
      %cst_60 = arith.constant 0.000000e+00 : bf16
      %62 = vector.broadcast %cst_60 : bf16 to vector<18x64xbf16>
      %c163 = arith.constant 163 : index
      %c0_61 = arith.constant 0 : index
      %63 = vector.load %arg9[%c163, %c0_61] : memref<184x64xbf16, #tpu.memory_space<vmem>>, vector<18x64xbf16>
      tpu.vector_store %arg9[%c163, %c0_61], %62 {strides = array<i32>} : memref<184x64xbf16, #tpu.memory_space<vmem>>, vector<18x64xbf16>,
    } else {
    }
    %c0_18 = arith.constant 0 : index
    %c0_19 = arith.constant 0 : index
    %24 = vector.load %arg9[%c0_18, %c0_19] : memref<184x64xbf16, #tpu.memory_space<vmem>>, vector<144x64xbf16>
    %c1_20 = arith.constant 1 : index
    %c0_21 = arith.constant 0 : index
    %25 = vector.load %arg9[%c1_20, %c0_21] : memref<184x64xbf16, #tpu.memory_space<vmem>>, vector<144x64xbf16>
    %c2 = arith.constant 2 : index
    %c0_22 = arith.constant 0 : index
    %26 = vector.load %arg9[%c2, %c0_22] : memref<184x64xbf16, #tpu.memory_space<vmem>>, vector<144x64xbf16>
    %27 = tpu.concatenate %24, %25, %26 in 1 : vector<144x64xbf16>, vector<144x64xbf16>, vector<144x64xbf16> -> vector<144x192xbf16>
    %c0_23 = arith.constant 0 : index
    %c0_24 = arith.constant 0 : index
    %c0_25 = arith.constant 0 : index
    %28 = vector.load %arg5[%c0_23, %c0_24, %c0_25] : memref<3x192x64xbf16, #tpu.memory_space<vmem>>, vector<1x192x64xbf16>
    %29 = vector.shape_cast %28 : vector<1x192x64xbf16> to vector<192x64xbf16>
    %cst_26 = arith.constant dense<0.000000e+00> : vector<144x64xf32>
    %30 = tpu.matmul %27, %29, %cst_26 {dimension_numbers = #tpu.dot_dimension_numbers<[1], [0], [0], [1], [0, 0, 1, 1], [], []>} : vector<144x192xbf16>, vector<192x64xbf16>, vector<144x64xf32> -> vector<144x64xf32>
    %c0_27 = arith.constant 0 : index
    %c0_28 = arith.constant 0 : index
    %31 = vector.load %arg10[%c0_27, %c0_28] : memref<144x64xf32, #tpu.memory_space<vmem>>, vector<144x64xf32>
    tpu.vector_store %arg10[%c0_27, %c0_28], %30 {strides = array<i32>} : memref<144x64xf32, #tpu.memory_space<vmem>>, vector<144x64xf32>,
    %c18 = arith.constant 18 : index
    %c0_29 = arith.constant 0 : index
    %32 = vector.load %arg9[%c18, %c0_29] : memref<184x64xbf16, #tpu.memory_space<vmem>>, vector<144x64xbf16>
    %c19 = arith.constant 19 : index
    %c0_30 = arith.constant 0 : index
    %33 = vector.load %arg9[%c19, %c0_30] : memref<184x64xbf16, #tpu.memory_space<vmem>>, vector<144x64xbf16>
    %c20 = arith.constant 20 : index
    %c0_31 = arith.constant 0 : index
    %34 = vector.load %arg9[%c20, %c0_31] : memref<184x64xbf16, #tpu.memory_space<vmem>>, vector<144x64xbf16>
    %35 = tpu.concatenate %32, %33, %34 in 1 : vector<144x64xbf16>, vector<144x64xbf16>, vector<144x64xbf16> -> vector<144x192xbf16>
    %c1_32 = arith.constant 1 : index
    %c0_33 = arith.constant 0 : index
    %c0_34 = arith.constant 0 : index
    %36 = vector.load %arg5[%c1_32, %c0_33, %c0_34] : memref<3x192x64xbf16, #tpu.memory_space<vmem>>, vector<1x192x64xbf16>
    %37 = vector.shape_cast %36 : vector<1x192x64xbf16> to vector<192x64xbf16>
    %cst_35 = arith.constant dense<0.000000e+00> : vector<144x64xf32>
    %38 = tpu.matmul %35, %37, %cst_35 {dimension_numbers = #tpu.dot_dimension_numbers<[1], [0], [0], [1], [0, 0, 1, 1], [], []>} : vector<144x192xbf16>, vector<192x64xbf16>, vector<144x64xf32> -> vector<144x64xf32>
    %c0_36 = arith.constant 0 : index
    %c0_37 = arith.constant 0 : index
    %39 = vector.load %arg10[%c0_36, %c0_37] : memref<144x64xf32, #tpu.memory_space<vmem>>, vector<144x64xf32>
    %40 = arith.addf %39, %38 : vector<144x64xf32>
    %c0_38 = arith.constant 0 : index
    %c0_39 = arith.constant 0 : index
    %41 = vector.load %arg10[%c0_38, %c0_39] : memref<144x64xf32, #tpu.memory_space<vmem>>, vector<144x64xf32>
    tpu.vector_store %arg10[%c0_38, %c0_39], %40 {strides = array<i32>} : memref<144x64xf32, #tpu.memory_space<vmem>>, vector<144x64xf32>,
    %c36 = arith.constant 36 : index
    %c0_40 = arith.constant 0 : index
    %42 = vector.load %arg9[%c36, %c0_40] : memref<184x64xbf16, #tpu.memory_space<vmem>>, vector<144x64xbf16>
    %c37 = arith.constant 37 : index
    %c0_41 = arith.constant 0 : index
    %43 = vector.load %arg9[%c37, %c0_41] : memref<184x64xbf16, #tpu.memory_space<vmem>>, vector<144x64xbf16>
    %c38 = arith.constant 38 : index
    %c0_42 = arith.constant 0 : index
    %44 = vector.load %arg9[%c38, %c0_42] : memref<184x64xbf16, #tpu.memory_space<vmem>>, vector<144x64xbf16>
    %45 = tpu.concatenate %42, %43, %44 in 1 : vector<144x64xbf16>, vector<144x64xbf16>, vector<144x64xbf16> -> vector<144x192xbf16>
    %c2_43 = arith.constant 2 : index
    %c0_44 = arith.constant 0 : index
    %c0_45 = arith.constant 0 : index
    %46 = vector.load %arg5[%c2_43, %c0_44, %c0_45] : memref<3x192x64xbf16, #tpu.memory_space<vmem>>, vector<1x192x64xbf16>
    %47 = vector.shape_cast %46 : vector<1x192x64xbf16> to vector<192x64xbf16>
    %cst_46 = arith.constant dense<0.000000e+00> : vector<144x64xf32>
    %48 = tpu.matmul %45, %47, %cst_46 {dimension_numbers = #tpu.dot_dimension_numbers<[1], [0], [0], [1], [0, 0, 1, 1], [], []>} : vector<144x192xbf16>, vector<192x64xbf16>, vector<144x64xf32> -> vector<144x64xf32>
    %c0_47 = arith.constant 0 : index
    %c0_48 = arith.constant 0 : index
    %49 = vector.load %arg10[%c0_47, %c0_48] : memref<144x64xf32, #tpu.memory_space<vmem>>, vector<144x64xf32>
    %50 = arith.addf %49, %48 : vector<144x64xf32>
    %c0_49 = arith.constant 0 : index
    %c0_50 = arith.constant 0 : index
    %51 = vector.load %arg10[%c0_49, %c0_50] : memref<144x64xf32, #tpu.memory_space<vmem>>, vector<144x64xf32>
    tpu.vector_store %arg10[%c0_49, %c0_50], %50 {strides = array<i32>} : memref<144x64xf32, #tpu.memory_space<vmem>>, vector<144x64xf32>,
    %c0_51 = arith.constant 0 : index
    %c0_52 = arith.constant 0 : index
    %52 = vector.load %arg10[%c0_51, %c0_52] : memref<144x64xf32, #tpu.memory_space<vmem>>, vector<144x64xf32>
    %c0_53 = arith.constant 0 : index
    %c0_54 = arith.constant 0 : index
    %53 = vector.load %arg6[%c0_53, %c0_54] : memref<1x64xf32, #tpu.memory_space<vmem>>, vector<1x64xf32>
    %54 = vector.broadcast %53 : vector<1x64xf32> to vector<144x64xf32>
    %55 = arith.addf %52, %54 : vector<144x64xf32>
    %cst_55 = arith.constant 0.000000e+00 : f32
    %56 = vector.broadcast %cst_55 : f32 to vector<144x64xf32>
    %57 = arith.maximumf %55, %56 : vector<144x64xf32>
    %58 = arith.truncf %57 : vector<144x64xf32> to vector<144x64xbf16>
    %c0_56 = arith.constant 0 : index
    %c0_57 = arith.constant 0 : index
    %c0_58 = arith.constant 0 : index
    %c0_59 = arith.constant 0 : index
    %59 = vector.load %arg8[%c0_56, %c0_57, %c0_58, %c0_59] : memref<1x1x144x64xbf16, #tpu.memory_space<vmem>>, vector<1x1x144x64xbf16>
    %60 = vector.shape_cast %59 : vector<1x1x144x64xbf16> to vector<144x64xbf16>
    %61 = vector.shape_cast %58 : vector<144x64xbf16> to vector<1x1x144x64xbf16>
    tpu.vector_store %arg8[%c0_56, %c0_57, %c0_58, %c0_59], %61 {strides = array<i32>} : memref<1x1x144x64xbf16, #tpu.memory_space<vmem>>, vector<1x1x144x64xbf16>,
    return
  }
  func.func @transform_0(%arg0: i32, %arg1: i32) -> (i32, i32, i32, i32) {
    %c0_i32 = arith.constant 0 : i32
    %c0_i32_0 = arith.constant 0 : i32
    %c0_i32_1 = arith.constant 0 : i32
    return %arg0, %arg1, %c0_i32, %c0_i32_0 : i32, i32, i32, i32
  }
  func.func @transform_1(%arg0: i32, %arg1: i32) -> (i32, i32) {
    %c0_i32 = arith.constant 0 : i32
    %c0_i32_0 = arith.constant 0 : i32
    %c0_i32_1 = arith.constant 0 : i32
    return %c0_i32, %c0_i32_0 : i32, i32
  }
  func.func @transform_2(%arg0: i32, %arg1: i32) -> (i32, i32) {
    %c0_i32 = arith.constant 0 : i32
    %c0_i32_0 = arith.constant 0 : i32
    %c0_i32_1 = arith.constant 0 : i32
    return %c0_i32, %c0_i32_0 : i32, i32
  }
  func.func @transform_3(%arg0: i32, %arg1: i32) -> (i32, i32, i32) {
    %c0_i32 = arith.constant 0 : i32
    %c0_i32_0 = arith.constant 0 : i32
    %c0_i32_1 = arith.constant 0 : i32
    %c0_i32_2 = arith.constant 0 : i32
    return %c0_i32, %c0_i32_0, %c0_i32_1 : i32, i32, i32
  }
  func.func @transform_4(%arg0: i32, %arg1: i32) -> (i32, i32) {
    %c0_i32 = arith.constant 0 : i32
    %c0_i32_0 = arith.constant 0 : i32
    %c0_i32_1 = arith.constant 0 : i32
    return %c0_i32, %c0_i32_0 : i32, i32
  }
  func.func @transform_5(%arg0: i32, %arg1: i32) -> (i32, i32) {
    %c0_i32 = arith.constant 0 : i32
    %c0_i32_0 = arith.constant 0 : i32
    %c0_i32_1 = arith.constant 0 : i32
    return %c0_i32, %c0_i32_0 : i32, i32
  }
  func.func @transform_6(%arg0: i32, %arg1: i32) -> (i32, i32, i32, i32) {
    %c0_i32 = arith.constant 0 : i32
    %c0_i32_0 = arith.constant 0 : i32
    %c0_i32_1 = arith.constant 0 : i32
    return %arg0, %arg1, %c0_i32, %c0_i32_0 : i32, i32, i32, i32
  }
}

</mosaic_0001>

<bundles_post_ra>
// kernel: tpu_custom_call.1
= control target key start
LH: loop header
LB: loop body
LE: loop exit
PB: predicated region body
PF: predicated region fallthrough
CT: control target
= control target key end

     0   :  { %s3395_s21 = smov 0   ;;  %s3397_s22 = smov 0   ;;  %s4462_s0 = inlined_call_operand.vmem [shape: bf16[2,2,180,32], index: 0, kind: input, shape index: {}]   ;;  %s4463_s1 = inlined_call_operand.vmem [shape: bf16[32,64], index: 1, kind: input, shape index: {}]   ;;  %s4464_s2 = inlined_call_operand.vmem [shape: f32[1,64], index: 2, kind: input, shape index: {}]   ;;  %s4465_s3 = inlined_call_operand.vmem [shape: bf16[3,192,64], index: 3, kind: input, shape index: {}]   ;;  %s4466_s4 = inlined_call_operand.vmem [shape: f32[1,64], index: 4, kind: input, shape index: {}]   ;;  %s4467_s5 = inlined_call_operand.vmem [shape: f32[180,1], index: 5, kind: input, shape index: {}]   ;;  %s4468_s6 = inlined_call_operand.vmem [shape: bf16[2,2,144,64], index: 6, kind: output, shape index: {}]  }
   0x1   :  { %s3399_s23 = smov 0   ;;  %s3401_s24 = smov 0  }
   0x2   :  { %s3403_s25 = smov 0  }
   0x3 LB: > { %s25_s26 = sadd.s32 1, %s3346_s23  ;;  %s28_s27 = sadd.s32 1, %s3350_s24  ;;  %s3354_s25 = sphi %s3403_s25, %s16_s25   ;;  %s3350_s24 = sphi %s3401_s24, %s4478_s24   ;;  %s3346_s23 = sphi %s3399_s23, %s4477_s23   ;;  %s3342_s22 = sphi %s3397_s22, %s4476_s22   ;;  %s3338_s21 = sphi %s3395_s21, %s4475_s21  }
   0x4   : > { %p26_p0 = scmp.ge.s32.totalorder %s25_s26, 2  ;;  %p2777_p1 = scmp.ge.s32.totalorder %s3354_s25, 1 }
   0x5   : > { %p232_p2 = scmp.lt.s32.totalorder %s3354_s25, 5 }
   0x6   : > { %s4480_s26 = smov (%p26_p0, %s25_s26), 0  ;;  %s4482_s27 = smov (!%p26_p0, %s28_s27), %s3350_s24 }
   0x7   : > { %p233_p3 = pnand %p2777_p1, %p232_p2  ;;  %p30_p4 = scmp.ge.s32.totalorder %s4482_s27, 2 }
   0x8   : > { %p270_p5 = scmp.lt.s32.totalorder (!%p233_p3), %s3342_s22, 1  ;;  %p272_p6 = scmp.lt.s32.totalorder (!%p233_p3), %s3338_s21, 1 }
   0x9   : > { %s4484_s27 = smov (%p30_p4, %s4482_s27), 0  ;;  %236 = sbr.rel (%p233_p3) target bundleno = 902 (0x386), region = 44 }
   0xa   : > { %p2844_p7 = scmp.ne.s32.totalorder (!%p233_p3), %s3338_s21, 0 }
   0xe   : > { %v3175_v0 = vld [vmem:[%s4463_s1 + $0x8] sm:$0xff]  ;;  %v3356_v1 = vmov 0   ;;  %v518_v2 = vld [vmem:[%s4467_s5] sm:$0xff]  ;;  %v520_v3 = vld [vmem:[%s4467_s5 + $0x10] sm:$0xff]  ;;  %s4486_s22 = smov (!%p270_p5, %s3342_s22), 1  ;;  %vm390_vm0 = vcmask 261120  }
   0xf   : > { %3311 = vset.pattern.permute.xlu0 %v3356_v1  ;;  %3312 = vset.pattern.permute.xlu1 %v3356_v1  ;;  %v3174_v4 = vld [vmem:[%s4463_s1] sm:$0xff]  ;;  %s273_s12 = scalar_select %p272_p6, %s3338_s21, 1  ;;  %v519_v5 = vld [vmem:[%s4467_s5 + $0x8] sm:$0xff]  ;;  %v521_v7 = vld [vmem:[%s4467_s5 + $0x18] sm:$0xff]  ;;  %vm679_vm1 = vcmask 516096   ;;  %vm938_vm4 = vcmask 519168  }
  0x10   : > { %433 = vmatpush.bf16.msra.mxu0 %v3175_v0  ;;  %543 = vperm.xlu0 %3311, %v518_v2   ;;  %s3264_s13 = smul.u32 46, %s4486_s22  ;;  %v524_v9 = vld [vmem:[%s4467_s5 + $0x30] sm:$0xff]  ;;  %v522_v11 = vld [vmem:[%s4467_s5 + $0x20] sm:$0xff]  ;;  %v525_v12 = vld [vmem:[%s4467_s5 + $0x38] sm:$0xff]  ;;  %vm680_vm2 = vsmask.f32 256 }
  0x11   : > { %553 = vperm.xlu1 %3312, %v520_v3   ;;  %3313 = vset.pattern.permute.xlu2 %v3356_v1  ;;  %s3263_s14 = smul.u32 23, %s273_s12  ;;  %v523_v13 = vld [vmem:[%s4467_s5 + $0x28] sm:$0xff]  ;;  %v528_v16 = vld [vmem:[%s4467_s5 + $0x50] sm:$0xff]  ;;  %v526_v18 = vld [vmem:[%s4467_s5 + $0x40] sm:$0xff]  ;;  %vm939_vm5 = vsmask.f32 7938 }
  0x12   : > { %s3265_s15 = smul.u32 18, %s273_s12  ;;  %563 = vperm.xlu2 %3313, %v522_v11   ;;  %v527_v15 = vld [vmem:[%s4467_s5 + $0x48] sm:$0xff]  ;;  %v530_v19 = vld [vmem:[%s4467_s5 + $0x60] sm:$0xff]  ;;  %v529_v24 = vld [vmem:[%s4467_s5 + $0x58] sm:$0xff]  ;;  %vm708_vm7 = vsmask.f32 4368 }
  0x13   : > { %s276_s16 = sadd.s32 %s3264_s13, %s3263_s14  ;;  %s3266_s17 = smul.u32 36, %s4486_s22  ;;  %v539_v21 = vld [vmem:[%s4467_s5 + $0xa8] sm:$0xff]  ;;  %v532_v25 = vld [vmem:[%s4467_s5 + $0x70] sm:$0xff]  ;;  %v682_v26 = vld [vmem:[#allocation2] sm:$0x1]  ;;  %vm966_vm9 = vcmask 518144  }
  0x14   : > { %434 = vmatpush.bf16.msra.mxu0 %v3174_v4  ;;  %s2778_s20 = sshll.u32 %s276_s16, 2  ;;  %v531_v22 = vld [vmem:[%s4467_s5 + $0x68] sm:$0xff]  ;;  %vm681_vm3 = vmand %vm679_vm1, %vm680_vm2  ;;  %v534_v29 = vld [vmem:[%s4467_s5 + $0x80] sm:$0xff]  ;;  %vm967_vm10 = vsmask.f32 2304  ;;  %vm972_vm12 = vcmask 519170  }
  0x15   : > { %s3447_s30 = scalar_lea.vmem %s4462_s0, %s2778_s20  ;;  %s285_s7 = sadd.s32 %s3266_s17, %s3265_s15  ;;  %v683_v27 = vsel %vm681_vm3, 0, %v682_v26  ;;  %v535_v28 = vld [vmem:[%s4467_s5 + $0x88] sm:$0xff]  ;;  %v538_v31 = vld [vmem:[%s4467_s5 + $0xa0] sm:$0xff]  ;;  %v537_v32 = vld [vmem:[%s4467_s5 + $0x98] sm:$0xff]  ;;  %vm973_vm13 = vsmask.f32 7946 }
  0x16   : > { %s2779_s8 = sshll.u32 %s285_s7, 2  ;;  %v3163_v6 = vld [vmem:[%s3447_s30] sm:$0xff]  ;;  %v3164_v8 = vld [vmem:[%s3447_s30 + $0x8] sm:$0xff]  ;;  %v3165_v10 = vld [vmem:[%s3447_s30 + $0x10] sm:$0xff]  ;;  %684 = vst [vmem:[#allocation2] sm:$0x1] %v683_v27 }
  0x17   : > { %s3453_s10 = scalar_lea.vmem %s4468_s6, %s2779_s8  ;;  %2832 = vmatmul.msk.bf16.vlgmr.msra.gmra.mxu0 %vm390_vm0, %v3163_v6  ;;  %v3166_v14 = vld [vmem:[%s3447_s30 + $0x18] sm:$0xff]  ;;  %v3167_v17 = vld [vmem:[%s3447_s30 + $0x20] sm:$0xff]  ;;  %v3168_v20 = vld [vmem:[%s3447_s30 + $0x28] sm:$0xff] }
  0x18   : > { %548 = vperm.xlu0 %3311, %v519_v5   ;;  %v3169_v23 = vld [vmem:[%s3447_s30 + $0x30] sm:$0xff]  ;;  %v3170_v30 = vld [vmem:[%s3447_s30 + $0x38] sm:$0xff]  ;;  %v3528_v34 = vld [vmem:[%s4464_s2] ss:$0 sm:$0xff] }
  0x19   : > { %558 = vperm.xlu1 %3312, %v521_v7   ;;  %v540_v33 = vld [vmem:[%s4467_s5 + $0xb0] sm:$0xf]  ;;  %v3171_v35 = vld [vmem:[%s3447_s30 + $0x40] sm:$0xff]  ;;  %v533_v39 = vld [vmem:[%s4467_s5 + $0x78] sm:$0xff] }
  0x1a   : > { %568 = vperm.xlu2 %3313, %v523_v13   ;;  %vm3538_vm6 = vmand %vm938_vm4, %vm939_vm5  ;;  %v3172_v56 = vld [vmem:[%s3447_s30 + $0x48] sm:$0xff]  ;;  %v536_v0 = vld [vmem:[%s4467_s5 + $0x90] sm:$0xff] }
  0x1b   : > { %vm3551_vm8 = vmor %vm680_vm2, %vm708_vm7 }
  0x1c   : > { %vm3648_vm11 = vmand %vm966_vm9, %vm967_vm10 }
  0x1d   : > { %v941_v51 = vld [vmem:[#allocation2] sm:$0xf]  ;;  %vm974_vm14 = vmand %vm972_vm12, %vm973_vm13 }
  0x20   : > { %573 = vperm.xlu0 %3311, %v524_v9  }
  0x21   : > { %578 = vperm.xlu1 %3312, %v525_v12  }
  0x22   : > { %583 = vperm.xlu2 %3313, %v526_v18  }
  0x27   : > { %2833 = vmatmul.msk.bf16.gmra.mxu0 %vm390_vm0, %v3164_v8 }
  0x28   : > { %588 = vperm.xlu0 %3311, %v527_v15  }
  0x29   : > { %593 = vperm.xlu1 %3312, %v528_v16  }
  0x2a   : > { %598 = vperm.xlu2 %3313, %v529_v24  }
  0x30   : > { %603 = vperm.xlu0 %3311, %v530_v19   ;;  %v3173_v19 = vld [vmem:[%s3447_s30 + $0x50] sm:$0xff] }
  0x31   : > { %648 = vperm.xlu1 %3312, %v539_v21  }
  0x32   : > { %653 = vperm.xlu2 %3313, %v540_v33   ;;  %v311_v33 = vld [vmem:[%s3447_s30 + $0x58] sm:$0x3] }
  0x37   : > { %2834 = vmatmul.msk.bf16.gmra.mxu0 %vm390_vm0, %v3165_v10 }
  0x38   : > { %608 = vperm.xlu0 %3311, %v531_v22  }
  0x39   : > { %613 = vperm.xlu1 %3312, %v532_v25  }
  0x3a   : > { %618 = vperm.xlu2 %3313, %v533_v39  }
  0x40   : > { %623 = vperm.xlu0 %3311, %v534_v29  }
  0x41   : > { %628 = vperm.xlu1 %3312, %v535_v28  }
  0x42   : > { %633 = vperm.xlu2 %3313, %v536_v0  }
  0x47   : > { %2835 = vmatmul.msk.bf16.gmra.mxu0 %vm390_vm0, %v3166_v14 }
  0x48   : > { %638 = vperm.xlu0 %3311, %v537_v32  }
  0x49   : > { %643 = vperm.xlu1 %3312, %v538_v31  }
  0x57   : > { %2836 = vmatmul.msk.bf16.gmra.mxu0 %vm390_vm0, %v3167_v17 }
  0x67   : > { %2837 = vmatmul.msk.bf16.gmra.mxu0 %vm390_vm0, %v3168_v20 }
  0x6c   : > { %v564_v21 = vpop.permute.xlu2 %563 }
  0x77   : > { %2838 = vmatmul.msk.bf16.gmra.mxu0 %vm390_vm0, %v3169_v23 }
  0x82   : > { %v544_v37 = vpop.permute.xlu0 %543 }
  0x83   : > { %v554_v58 = vpop.permute.xlu1 %553 }
  0x87   : > { %2839 = vmatmul.msk.bf16.gmra.mxu0 %vm390_vm0, %v3170_v30 }
  0x8a   : > { %v549_v46 = vpop.permute.xlu0 %548 }
  0x8b   : > { %v559_v10 = vpop.permute.xlu1 %558 }
  0x93   : > { %v579_v0 = vpop.permute.xlu1 %578 }
  0x94   : > { %v436_v36 = vpop.f32.mrf.mxu0 }
  0x95   : > { %v437_v38 = vadd.f32 %v3528_v34, %v436_v36 }
  0x97   : > { %v495_v40 = vmax.f32 %v437_v38, 0.0  ;;  %2840 = vmatmul.msk.bf16.gmra.mxu0 %vm390_vm0, %v3171_v35 }
  0x99   : > { %v656_v41 = vmul.f32 %v544_v37, %v495_v40  ;;  %v569_v37 = vpop.permute.xlu2 %568 }
  0x9b   : > { %v685_v42 = vpack.c.bf16 %v656_v41, %v656_v41  ;;  %v365_v41 = vunpack.c.l.b16 %v311_v33 }
  0x9c   : > { %v438_v43 = vpop.f32.mrf.mxu0 }
  0x9d   : > { %v711_v44 = vshrl.u32 %v685_v42, 16  ;;  %v439_v45 = vadd.f32 %v3528_v34, %v438_v43  ;;  %v714_v48 = vshll.u32 %v685_v42, 16 }
  0x9f   : > { %v713_v47 = vrot.slane %v711_v44, 7  ;;  %v496_v49 = vmax.f32 %v439_v45, 0.0 }
  0xa1   : > { %v716_v52 = vor.u32 %v714_v48, %v713_v47  ;;  %v657_v53 = vmul.f32 %v549_v46, %v496_v49  ;;  %v717_v2 = vrot.slane %v713_v47, 4  ;;  %v377_v47 = vpack.c.b16 %v365_v41, %v365_v41 }
  0xa3   : > { %v942_v54 = vsel %vm3538_vm6, %v716_v52, %v941_v51  ;;  %v686_v55 = vpack.c.bf16 %v657_v53, %v657_v53  ;;  %v574_v52 = vpop.permute.xlu0 %573 }
  0xa4   : > { %943 = vst [vmem:[#allocation2] sm:$0xf] %v942_v54  ;;  %v441_v57 = vpop.f32.mrf.mxu0 }
  0xa5   : > { %v719_v59 = vshrl.u32 %v686_v55, 16  ;;  %v442_v60 = vadd.f32 %v3528_v34, %v441_v57  ;;  %v722_v62 = vshll.u32 %v686_v55, 16 }
  0xa7   : > { %v721_v61 = vrot.slane %v719_v59, 7  ;;  %v497_v63 = vmax.f32 %v442_v60, 0.0  ;;  %2841 = vmatmul.msk.bf16.gmra.mxu0 %vm390_vm0, %v3172_v56 }
  0xa9   : > { %v724_v3 = vor.u32 %v722_v62, %v721_v61  ;;  %v658_v4 = vmul.f32 %v554_v58, %v497_v63  ;;  %v726_v14 = vrot.slane %v721_v61, 4 }
  0xab   : > { %v725_v5 = vsel %vm3551_vm8, %v717_v2, %v724_v3  ;;  %v687_v6 = vpack.c.bf16 %v658_v4, %v658_v4 }
  0xac   : > { %945 = vst.msk [vmem:[#allocation2 + $0x4] sm:$0xf] %vm938_vm4, %v725_v5  ;;  %v443_v7 = vpop.f32.mrf.mxu0 }
  0xad   : > { %v728_v8 = vshrl.u32 %v687_v6, 16  ;;  %v444_v9 = vadd.f32 %v3528_v34, %v443_v7  ;;  %v731_v12 = vshll.u32 %v687_v6, 16 }
  0xaf   : > { %v730_v11 = vrot.slane %v728_v8, 7  ;;  %v498_v13 = vmax.f32 %v444_v9, 0.0 }
  0xb1   : > { %v733_v15 = vor.u32 %v731_v12, %v730_v11  ;;  %v659_v16 = vmul.f32 %v559_v10, %v498_v13  ;;  %v735_v27 = vrot.slane %v730_v11, 4  ;;  %v584_v13 = vpop.permute.xlu2 %583 }
  0xb3   : > { %v734_v17 = vsel %vm3551_vm8, %v726_v14, %v733_v15  ;;  %v688_v18 = vpack.c.bf16 %v659_v16, %v659_v16 }
  0xb4   : > { %946 = vst.msk [vmem:[#allocation2 + $0x8] sm:$0xf] %vm938_vm4, %v734_v17  ;;  %v446_v20 = vpop.f32.mrf.mxu0 }
  0xb5   : > { %v737_v22 = vshrl.u32 %v688_v18, 16  ;;  %v447_v23 = vadd.f32 %v3528_v34, %v446_v20  ;;  %v740_v25 = vshll.u32 %v688_v18, 16 }
  0xb7   : > { %v739_v24 = vrot.slane %v737_v22, 7  ;;  %v499_v26 = vmax.f32 %v447_v23, 0.0  ;;  %2842 = vmatmul.msk.bf16.gmra.mxu0 %vm390_vm0, %v3173_v19 }
  0xb9   : > { %v742_v28 = vor.u32 %v740_v25, %v739_v24  ;;  %v660_v29 = vmul.f32 %v564_v21, %v499_v26  ;;  %v744_v42 = vrot.slane %v739_v24, 4  ;;  %v589_v25 = vpop.permute.xlu0 %588 }
  0xbb   : > { %v743_v30 = vsel %vm3551_vm8, %v735_v27, %v742_v28  ;;  %v689_v31 = vpack.c.bf16 %v660_v29, %v660_v29 }
  0xbc   : > { %947 = vst.msk [vmem:[#allocation2 + $0xc] sm:$0xf] %vm938_vm4, %v743_v30  ;;  %v448_v32 = vpop.f32.mrf.mxu0 }
  0xbd   : > { %v746_v35 = vshrl.u32 %v689_v31, 16  ;;  %v449_v36 = vadd.f32 %v3528_v34, %v448_v32  ;;  %v749_v39 = vshll.u32 %v689_v31, 16 }
  0xbf   : > { %v748_v38 = vrot.slane %v746_v35, 7  ;;  %v500_v40 = vmax.f32 %v449_v36, 0.0 }
  0xc1   : > { %v751_v43 = vor.u32 %v749_v39, %v748_v38  ;;  %v661_v44 = vmul.f32 %v569_v37, %v500_v40  ;;  %v753_v56 = vrot.slane %v748_v38, 4  ;;  %v594_v38 = vpop.permute.xlu1 %593 }
  0xc3   : > { %v752_v45 = vsel %vm3551_vm8, %v744_v42, %v751_v43  ;;  %v690_v46 = vpack.c.bf16 %v661_v44, %v661_v44 }
  0xc4   : > { %948 = vst.msk [vmem:[#allocation2 + $0x10] sm:$0xf] %vm938_vm4, %v752_v45  ;;  %v451_v48 = vpop.f32.mrf.mxu0 }
  0xc5   : > { %v755_v49 = vshrl.u32 %v690_v46, 16  ;;  %v452_v51 = vadd.f32 %v3528_v34, %v451_v48  ;;  %v758_v54 = vshll.u32 %v690_v46, 16 }
  0xc7   : > { %v757_v53 = vrot.slane %v755_v49, 7  ;;  %v501_v55 = vmax.f32 %v452_v51, 0.0  ;;  %2843 = vmatmul.msk.bf16.gmra.mxu0 %vm390_vm0, %v377_v47  ;;  %v599_v51 = vpop.permute.xlu2 %598 }
  0xc9   : > { %v760_v57 = vor.u32 %v758_v54, %v757_v53  ;;  %v662_v58 = vmul.f32 %v574_v52, %v501_v55  ;;  %v762_v5 = vrot.slane %v757_v53, 4 }
  0xcb   : > { %v761_v59 = vsel %vm3551_vm8, %v753_v56, %v760_v57  ;;  %v691_v60 = vpack.c.bf16 %v662_v58, %v662_v58 }
  0xcc   : > { %949 = vst.msk [vmem:[#allocation2 + $0x14] sm:$0xf] %vm938_vm4, %v761_v59  ;;  %v453_v61 = vpop.f32.mrf.mxu0 }
  0xcd   : > { %v764_v62 = vshrl.u32 %v691_v60, 16  ;;  %v454_v63 = vadd.f32 %v3528_v34, %v453_v61  ;;  %v767_v3 = vshll.u32 %v691_v60, 16  ;;  %v604_v61 = vpop.permute.xlu0 %603 }
  0xcf   : > { %v766_v2 = vrot.slane %v764_v62, 7  ;;  %v502_v4 = vmax.f32 %v454_v63, 0.0 }
  0xd1   : > { %v769_v6 = vor.u32 %v767_v3, %v766_v2  ;;  %v663_v7 = vmul.f32 %v579_v0, %v502_v4  ;;  %v771_v17 = vrot.slane %v766_v2, 4 }
  0xd3   : > { %v770_v8 = vsel %vm3551_vm8, %v762_v5, %v769_v6  ;;  %v692_v9 = vpack.c.bf16 %v663_v7, %v663_v7 }
  0xd4   : > { %950 = vst.msk [vmem:[#allocation2 + $0x18] sm:$0xf] %vm938_vm4, %v770_v8  ;;  %v456_v10 = vpop.f32.mrf.mxu0 }
  0xd5   : > { %v773_v11 = vshrl.u32 %v692_v9, 16  ;;  %v457_v12 = vadd.f32 %v3528_v34, %v456_v10  ;;  %v776_v15 = vshll.u32 %v692_v9, 16  ;;  %v3602_v10 = vpop.permute.xlu1 %648 }
  0xd7   : > { %v775_v14 = vrot.slane %v773_v11, 7  ;;  %v503_v16 = vmax.f32 %v457_v12, 0.0 }
  0xd9   : > { %v778_v18 = vor.u32 %v776_v15, %v775_v14  ;;  %v664_v19 = vmul.f32 %v584_v13, %v503_v16  ;;  %v780_v29 = vrot.slane %v775_v14, 4  ;;  %v609_v13 = vpop.permute.xlu0 %608 }
  0xdb   : > { %v779_v20 = vsel %vm3551_vm8, %v771_v17, %v778_v18  ;;  %v693_v21 = vpack.c.bf16 %v664_v19, %v664_v19 }
  0xdc   : > { %951 = vst.msk [vmem:[#allocation2 + $0x1c] sm:$0xf] %vm938_vm4, %v779_v20  ;;  %v458_v22 = vpop.f32.mrf.mxu0 }
  0xdd   : > { %v782_v23 = vshrl.u32 %v693_v21, 16  ;;  %v459_v24 = vadd.f32 %v3528_v34, %v458_v22  ;;  %v785_v27 = vshll.u32 %v693_v21, 16 }
  0xdf   : > { %v784_v26 = vrot.slane %v782_v23, 7  ;;  %v504_v28 = vmax.f32 %v459_v24, 0.0  ;;  %v3608_v23 = vpop.permute.xlu2 %653 }
  0xe1   : > { %v787_v30 = vor.u32 %v785_v27, %v784_v26  ;;  %v665_v31 = vmul.f32 %v589_v25, %v504_v28  ;;  %v789_v42 = vrot.slane %v784_v26, 4  ;;  %v614_v26 = vpop.permute.xlu1 %613 }
  0xe3   : > { %v788_v32 = vsel %vm3551_vm8, %v780_v29, %v787_v30  ;;  %v694_v33 = vpack.c.bf16 %v665_v31, %v665_v31 }
  0xe4   : > { %952 = vst.msk [vmem:[#allocation2 + $0x20] sm:$0xf] %vm938_vm4, %v788_v32  ;;  %v461_v35 = vpop.f32.mrf.mxu0 }
  0xe5   : > { %v791_v36 = vshrl.u32 %v694_v33, 16  ;;  %v462_v37 = vadd.f32 %v3528_v34, %v461_v35  ;;  %v794_v40 = vshll.u32 %v694_v33, 16 }
  0xe7   : > { %v793_v39 = vrot.slane %v791_v36, 7  ;;  %v505_v41 = vmax.f32 %v462_v37, 0.0 }
  0xe9   : > { %v796_v43 = vor.u32 %v794_v40, %v793_v39  ;;  %v666_v44 = vmul.f32 %v594_v38, %v505_v41  ;;  %v798_v55 = vrot.slane %v793_v39, 4  ;;  %v619_v39 = vpop.permute.xlu2 %618 }
  0xeb   : > { %v797_v45 = vsel %vm3551_vm8, %v789_v42, %v796_v43  ;;  %v695_v46 = vpack.c.bf16 %v666_v44, %v666_v44 }
  0xec   : > { %953 = vst.msk [vmem:[#allocation2 + $0x24] sm:$0xf] %vm938_vm4, %v797_v45  ;;  %v463_v47 = vpop.f32.mrf.mxu0 }
  0xed   : > { %v800_v48 = vshrl.u32 %v695_v46, 16  ;;  %v464_v49 = vadd.f32 %v3528_v34, %v463_v47  ;;  %v803_v53 = vshll.u32 %v695_v46, 16 }
  0xef   : > { %v802_v52 = vrot.slane %v800_v48, 7  ;;  %v506_v54 = vmax.f32 %v464_v49, 0.0 }
  0xf1   : > { %v805_v56 = vor.u32 %v803_v53, %v802_v52  ;;  %v667_v57 = vmul.f32 %v599_v51, %v506_v54  ;;  %v807_v4 = vrot.slane %v802_v52, 4 }
  0xf3   : > { %v806_v58 = vsel %vm3551_vm8, %v798_v55, %v805_v56  ;;  %v696_v59 = vpack.c.bf16 %v667_v57, %v667_v57  ;;  %v624_v55 = vpop.permute.xlu0 %623 }
  0xf4   : > { %954 = vst.msk [vmem:[#allocation2 + $0x28] sm:$0xf] %vm938_vm4, %v806_v58  ;;  %v466_v60 = vpop.f32.mrf.mxu0 }
  0xf5   : > { %v809_v62 = vshrl.u32 %v696_v59, 16  ;;  %v467_v63 = vadd.f32 %v3528_v34, %v466_v60  ;;  %v812_v2 = vshll.u32 %v696_v59, 16 }
  0xf7   : > { %v811_v0 = vrot.slane %v809_v62, 7  ;;  %v507_v3 = vmax.f32 %v467_v63, 0.0 }
  0xf9   : > { %v814_v5 = vor.u32 %v812_v2, %v811_v0  ;;  %v668_v6 = vmul.f32 %v604_v61, %v507_v3  ;;  %v816_v17 = vrot.slane %v811_v0, 4 }
  0xfb   : > { %v815_v7 = vsel %vm3551_vm8, %v807_v4, %v814_v5  ;;  %v697_v8 = vpack.c.bf16 %v668_v6, %v668_v6  ;;  %v629_v4 = vpop.permute.xlu1 %628 }
  0xfc   : > { %955 = vst.msk [vmem:[#allocation2 + $0x2c] sm:$0xf] %vm938_vm4, %v815_v7  ;;  %v468_v9 = vpop.f32.mrf.mxu0 }
  0xfd   : > { %v818_v11 = vshrl.u32 %v697_v8, 16  ;;  %v469_v12 = vadd.f32 %v3528_v34, %v468_v9  ;;  %v821_v15 = vshll.u32 %v697_v8, 16 }
  0xff   : > { %v820_v14 = vrot.slane %v818_v11, 7  ;;  %v508_v16 = vmax.f32 %v469_v12, 0.0 }
 0x101   : > { %v823_v18 = vor.u32 %v821_v15, %v820_v14  ;;  %v669_v19 = vmul.f32 %v609_v13, %v508_v16  ;;  %v825_v30 = vrot.slane %v820_v14, 4 }
 0x103   : > { %v824_v20 = vsel %vm3551_vm8, %v816_v17, %v823_v18  ;;  %v698_v21 = vpack.c.bf16 %v669_v19, %v669_v19  ;;  %v634_v17 = vpop.permute.xlu2 %633 }
 0x104   : > { %956 = vst.msk [vmem:[#allocation2 + $0x30] sm:$0xf] %vm938_vm4, %v824_v20  ;;  %v471_v22 = vpop.f32.mrf.mxu0 }
 0x105   : > { %v827_v24 = vshrl.u32 %v698_v21, 16  ;;  %v472_v25 = vadd.f32 %v3528_v34, %v471_v22  ;;  %v830_v28 = vshll.u32 %v698_v21, 16 }
 0x107   : > { %v829_v27 = vrot.slane %v827_v24, 7  ;;  %v509_v29 = vmax.f32 %v472_v25, 0.0 }
 0x109   : > { %v832_v31 = vor.u32 %v830_v28, %v829_v27  ;;  %v670_v32 = vmul.f32 %v614_v26, %v509_v29  ;;  %v834_v43 = vrot.slane %v829_v27, 4 }
 0x10b   : > { %v833_v33 = vsel %vm3551_vm8, %v825_v30, %v832_v31  ;;  %v699_v35 = vpack.c.bf16 %v670_v32, %v670_v32  ;;  %v639_v30 = vpop.permute.xlu0 %638 }
 0x10c   : > { %957 = vst.msk [vmem:[#allocation2 + $0x34] sm:$0xf] %vm938_vm4, %v833_v33  ;;  %v473_v36 = vpop.f32.mrf.mxu0 }
 0x10d   : > { %v836_v37 = vshrl.u32 %v699_v35, 16  ;;  %v474_v38 = vadd.f32 %v3528_v34, %v473_v36  ;;  %v839_v41 = vshll.u32 %v699_v35, 16 }
 0x10f   : > { %v838_v40 = vrot.slane %v836_v37, 7  ;;  %v510_v42 = vmax.f32 %v474_v38, 0.0 }
 0x111   : > { %v841_v44 = vor.u32 %v839_v41, %v838_v40  ;;  %v671_v45 = vmul.f32 %v619_v39, %v510_v42  ;;  %v843_v56 = vrot.slane %v838_v40, 4 }
 0x113   : > { %v842_v46 = vsel %vm3551_vm8, %v834_v43, %v841_v44  ;;  %v700_v47 = vpack.c.bf16 %v671_v45, %v671_v45  ;;  %v644_v43 = vpop.permute.xlu1 %643 }
 0x114   : > { %958 = vst.msk [vmem:[#allocation2 + $0x38] sm:$0xf] %vm938_vm4, %v842_v46  ;;  %v476_v48 = vpop.f32.mrf.mxu0 }
 0x115   : > { %v845_v49 = vshrl.u32 %v700_v47, 16  ;;  %v477_v51 = vadd.f32 %v3528_v34, %v476_v48  ;;  %v848_v53 = vshll.u32 %v700_v47, 16 }
 0x117   : > { %v847_v52 = vrot.slane %v845_v49, 7  ;;  %v511_v54 = vmax.f32 %v477_v51, 0.0 }
 0x119   : > { %v850_v57 = vor.u32 %v848_v53, %v847_v52  ;;  %v672_v58 = vmul.f32 %v624_v55, %v511_v54  ;;  %v852_v5 = vrot.slane %v847_v52, 4 }
 0x11b   : > { %v851_v59 = vsel %vm3551_vm8, %v843_v56, %v850_v57  ;;  %v701_v60 = vpack.c.bf16 %v672_v58, %v672_v58 }
 0x11c   : > { %959 = vst.msk [vmem:[#allocation2 + $0x3c] sm:$0xf] %vm938_vm4, %v851_v59  ;;  %v478_v61 = vpop.f32.mrf.mxu0 }
 0x11d   : > { %v854_v62 = vshrl.u32 %v701_v60, 16  ;;  %v479_v63 = vadd.f32 %v3528_v34, %v478_v61  ;;  %v857_v2 = vshll.u32 %v701_v60, 16 }
 0x11f   : > { %v856_v0 = vrot.slane %v854_v62, 7  ;;  %v512_v3 = vmax.f32 %v479_v63, 0.0 }
 0x121   : > { %v859_v6 = vor.u32 %v857_v2, %v856_v0  ;;  %v673_v7 = vmul.f32 %v629_v4, %v512_v3  ;;  %v861_v18 = vrot.slane %v856_v0, 4 }
 0x123   : > { %v860_v8 = vsel %vm3551_vm8, %v852_v5, %v859_v6  ;;  %v702_v9 = vpack.c.bf16 %v673_v7, %v673_v7 }
 0x124   : > { %960 = vst.msk [vmem:[#allocation2 + $0x40] sm:$0xf] %vm938_vm4, %v860_v8  ;;  %v481_v11 = vpop.f32.mrf.mxu0 }
 0x125   : > { %v863_v12 = vshrl.u32 %v702_v9, 16  ;;  %v482_v13 = vadd.f32 %v3528_v34, %v481_v11  ;;  %v866_v15 = vshll.u32 %v702_v9, 16 }
 0x127   : > { %v865_v14 = vrot.slane %v863_v12, 7  ;;  %v513_v16 = vmax.f32 %v482_v13, 0.0 }
 0x129   : > { %v868_v19 = vor.u32 %v866_v15, %v865_v14  ;;  %v674_v20 = vmul.f32 %v634_v17, %v513_v16  ;;  %v870_v31 = vrot.slane %v865_v14, 4  ;;  %v969_v15 = vld [vmem:[#allocation2 + $0x58] sm:$0x7] }
 0x12b   : > { %v869_v21 = vsel %vm3551_vm8, %v861_v18, %v868_v19  ;;  %v703_v22 = vpack.c.bf16 %v674_v20, %v674_v20 }
 0x12c   : > { %961 = vst.msk [vmem:[#allocation2 + $0x44] sm:$0xf] %vm938_vm4, %v869_v21  ;;  %v483_v24 = vpop.f32.mrf.mxu0 }
 0x12d   : > { %v872_v25 = vshrl.u32 %v703_v22, 16  ;;  %v484_v26 = vadd.f32 %v3528_v34, %v483_v24  ;;  %v875_v28 = vshll.u32 %v703_v22, 16 }
 0x12f   : > { %v874_v27 = vrot.slane %v872_v25, 7  ;;  %v514_v29 = vmax.f32 %v484_v26, 0.0 }
 0x131   : > { %v877_v32 = vor.u32 %v875_v28, %v874_v27  ;;  %v675_v33 = vmul.f32 %v639_v30, %v514_v29  ;;  %v879_v44 = vrot.slane %v874_v27, 4 }
 0x133   : > { %v878_v35 = vsel %vm3551_vm8, %v870_v31, %v877_v32  ;;  %v704_v36 = vpack.c.bf16 %v675_v33, %v675_v33 }
 0x134   : > { %962 = vst.msk [vmem:[#allocation2 + $0x48] sm:$0xf] %vm938_vm4, %v878_v35  ;;  %v486_v37 = vpop.f32.mrf.mxu0 }
 0x135   : > { %v881_v38 = vshrl.u32 %v704_v36, 16  ;;  %v487_v39 = vadd.f32 %v3528_v34, %v486_v37  ;;  %v884_v41 = vshll.u32 %v704_v36, 16 }
 0x137   : > { %v883_v40 = vrot.slane %v881_v38, 7  ;;  %v515_v42 = vmax.f32 %v487_v39, 0.0 }
 0x139   : > { %v886_v45 = vor.u32 %v884_v41, %v883_v40  ;;  %v676_v46 = vmul.f32 %v644_v43, %v515_v42  ;;  %v888_v56 = vrot.slane %v883_v40, 4 }
 0x13b   : > { %v887_v47 = vsel %vm3551_vm8, %v879_v44, %v886_v45  ;;  %v705_v48 = vpack.c.bf16 %v676_v46, %v676_v46 }
 0x13c   : > { %963 = vst.msk [vmem:[#allocation2 + $0x4c] sm:$0xf] %vm938_vm4, %v887_v47  ;;  %v488_v49 = vpop.f32.mrf.mxu0 }
 0x13d   : > { %v890_v51 = vshrl.u32 %v705_v48, 16  ;;  %v489_v52 = vadd.f32 %v3528_v34, %v488_v49  ;;  %v893_v54 = vshll.u32 %v705_v48, 16 }
 0x13f   : > { %v892_v53 = vrot.slane %v890_v51, 7  ;;  %v516_v55 = vmax.f32 %v489_v52, 0.0 }
 0x141   : > { %v895_v57 = vor.u32 %v893_v54, %v892_v53  ;;  %v677_v58 = vmul.f32 %v3602_v10, %v516_v55  ;;  %v897_v4 = vrot.slane %v892_v53, 4 }
 0x143   : > { %v896_v59 = vsel %vm3551_vm8, %v888_v56, %v895_v57  ;;  %v706_v60 = vpack.c.bf16 %v677_v58, %v677_v58 }
 0x144   : > { %964 = vst.msk [vmem:[#allocation2 + $0x50] sm:$0xf] %vm938_vm4, %v896_v59  ;;  %v491_v61 = vpop.f32.mrf.mxu0 }
 0x145   : > { %v899_v62 = vshrl.u32 %v706_v60, 16  ;;  %v492_v63 = vadd.f32 %v3528_v34, %v491_v61  ;;  %v902_v2 = vshll.u32 %v706_v60, 16 }
 0x147   : > { %v901_v0 = vrot.slane %v899_v62, 7  ;;  %v517_v3 = vmax.f32 %v492_v63, 0.0 }
 0x149   : > { %v904_v5 = vor.u32 %v902_v2, %v901_v0  ;;  %v678_v6 = vmul.f32 %v3608_v23, %v517_v3  ;;  %v906_v34 = vrot.slane %v901_v0, 4 }
 0x14b   : > { %v905_v10 = vsel %vm3551_vm8, %v897_v4, %v904_v5  ;;  %v707_v7 = vpack.c.bf16 %v678_v6, %v678_v6 }
 0x14c   : > { %965 = vst.msk [vmem:[#allocation2 + $0x54] sm:$0xf] %vm938_vm4, %v905_v10  ;;  %v493_v8 = vpop.f32.mrf.mxu0 }
 0x14d   : > { %v908_v9 = vshrl.u32 %v707_v7, 16  ;;  %v911_v12 = vshll.u32 %v707_v7, 16 }
 0x14f   : > { %v910_v11 = vrot.slane %v908_v9, 7 }
 0x151   : > { %v913_v13 = vor.u32 %v911_v12, %v910_v11 }
 0x153   : > { %v914_v23 = vsel %vm3551_vm8, %v906_v34, %v913_v13 }
 0x154   : > { %v970_v16 = vsel %vm3648_vm11, %v914_v23, %v969_v15 }
 0x155   : > { %971 = vst [vmem:[#allocation2 + $0x58] sm:$0x7] %v970_v16 }
 0x15a   : > { %981 = sbr.rel (%p2844_p7) target bundleno = 355 (0x163), region = 48 }
 0x15c   : > { %v975_v17 = vld [vmem:[#allocation2 + $0x58] sm:$0xc] }
 0x15d   : > { %v976_v18 = vsel %vm974_vm14, 0, %v975_v17 }
 0x15e   : > { %977 = vst [vmem:[#allocation2 + $0x58] sm:$0xc] %v976_v18 }
 0x15f   : > { %v982_v19 = vld [vmem:[#allocation2] sm:$0xf]  ;;  %vm986_vm15 = vcmask 517120   ;;  %vm987_vm0 = vsmask.f32 1280  ;;  %v3357_v20 = vmov 0  }
 0x160   : > { %v983_v1 = vsel %vm3538_vm6, 0, %v982_v19  ;;  %985 = vst.msk [vmem:[#allocation2 + $0x4] sm:$0xf] %vm938_vm4, %v3357_v20  ;;  %vm988_vm1 = vmand %vm986_vm15, %vm987_vm0  ;;  %v989_v21 = vld [vmem:[#allocation2 + $0x8] sm:$0x3] }
 0x161   : > { %984 = vst [vmem:[#allocation2] sm:$0xf] %v983_v1  ;;  %v990_v22 = vsel %vm988_vm1, 0, %v989_v21 }
 0x162   : > { %991 = vst [vmem:[#allocation2 + $0x8] sm:$0x3] %v990_v22 }
 0x163 PF: > { %p2845_p8 = scmp.ne.s32.totalorder %s3338_s21, 1 }
 0x165   : > { %995 = sbr.rel (%p2845_p8) target bundleno = 367 (0x16f), region = 52 }
 0x16a   : > { %vm996_vm2 = vcmask 519169   ;;  %vm997_vm3 = vsmask.f32 7942  ;;  %v999_v24 = vld [vmem:[#allocation2 + $0x50] sm:$0xe]  ;;  %v3358_v25 = vmov 0  }
 0x16b   : > { %vm998_vm5 = vmand %vm996_vm2, %vm997_vm3  ;;  %1002 = vst.msk [vmem:[#allocation2 + $0x54] sm:$0xf] %vm938_vm4, %v3358_v25  ;;  %v1003_v50 = vld [vmem:[#allocation2 + $0x58] sm:$0x7] }
 0x16c   : > { %v1000_v26 = vsel %vm998_vm5, 0, %v999_v24  ;;  %v1004_v27 = vsel %vm3648_vm11, 0, %v1003_v50 }
 0x16d   : > { %1001 = vst [vmem:[#allocation2 + $0x50] sm:$0xe] %v1000_v26 }
 0x16e   : > { %1005 = vst [vmem:[#allocation2 + $0x58] sm:$0x7] %v1004_v27 }
 0x16f PF: > { %v3195_v28 = vld [vmem:[%s4465_s3 + $0x58] sm:$0xff]  ;;  %v3669_v30 = vld [vmem:[#allocation2 + $0x20] sm:$0xff]  ;;  %v3194_v33 = vld [vmem:[%s4465_s3 + $0x50] sm:$0xff]  ;;  %vm1074_vm6 = vsmask.f32 7424  ;;  %s3359_s9 = smov 64  }
 0x170   : > { %v3667_v29 = vld [vmem:[#allocation2 + $0x18] sm:$0xff]  ;;  %v3673_v32 = vld [vmem:[#allocation2 + $0x20] sm:$0xff]  ;;  %1401 = vmatpush.bf16.msra.mxu2 %v3195_v28  ;;  %v3680_v37 = vld [vmem:[#allocation2 + $0x10] sm:$0xff]  ;;  %v1565_v38 = vshll.u32 %v3669_v30, 16  ;;  %v1569_v47 = vshrl.u32 %v3669_v30, 16  ;;  %vm1172_vm7 = vcmask 1046528  }
 0x171   : > { %v3671_v31 = vld [vmem:[#allocation2 + $0x18] sm:$0xff]  ;;  %v1557_v35 = vshll.u32 %v3667_v29, 16  ;;  %v1561_v36 = vshrl.u32 %v3667_v29, 16  ;;  %v1107_v41 = vshll.u32 %v3673_v32, 16  ;;  %v3686_v42 = vld [vmem:[#allocation2 + $0x28] sm:$0xff]  ;;  %v3688_v43 = vld [vmem:[#allocation2 + $0x30] sm:$0xff] }
 0x172   : > { %v1099_v39 = vshll.u32 %v3671_v31, 16  ;;  %v1103_v40 = vshrl.u32 %v3671_v31, 16  ;;  %v1091_v45 = vshll.u32 %v3680_v37, 16  ;;  %v1095_v46 = vshrl.u32 %v3680_v37, 16  ;;  %v3695_v48 = vld [vmem:[#allocation2 + $0x38] sm:$0xff]  ;;  %v3193_v53 = vld [vmem:[%s4465_s3 + $0x48] sm:$0xff] }
 0x173   : > { %v3690_v44 = vrot.slane %v1557_v35, 1  ;;  %v1567_v49 = vrot.slane %v1565_v38, 1  ;;  %v1109_v52 = vrot.slane %v1107_v41, 1  ;;  %v1573_v54 = vshll.u32 %v3686_v42, 16  ;;  %v3701_v55 = vld [vmem:[#allocation2 + $0x8] sm:$0xff]  ;;  %v3192_v9 = vld [vmem:[%s4465_s3 + $0x40] sm:$0xff] }
 0x174   : > { %v1101_v51 = vrot.slane %v1099_v39, 1  ;;  %1402 = vmatpush.bf16.msra.mxu2 %v3194_v33  ;;  %v3704_v57 = vrot.slane %v1091_v45, 1  ;;  %v1581_v58 = vshll.u32 %v3688_v43, 16  ;;  %v3240_v59 = vld [vmem:[#allocation2] sm:$0xf0]  ;;  %v1585_v63 = vshrl.u32 %v3688_v43, 16 }
 0x175   : > { %v1563_v56 = vor.u32 %v1561_v36, %v3690_v44  ;;  %v3241_v60 = vld [vmem:[#allocation2] sm:$0xe]  ;;  %v1575_v62 = vrot.slane %v1573_v54, 1  ;;  %v1589_v0 = vshll.u32 %v3695_v48, 16  ;;  %v3709_v2 = vld [vmem:[#allocation2 + $0x28] sm:$0xff]  ;;  %v1577_v6 = vshrl.u32 %v3686_v42, 16 }
 0x176   : > { %v1105_v61 = vor.u32 %v1103_v40, %v1101_v51  ;;  %v1097_v4 = vor.u32 %v1095_v46, %v3704_v57  ;;  %v1583_v5 = vrot.slane %v1581_v58, 1  ;;  %v3242_v7 = vor.u32 %v3241_v60, %v3240_v59  ;;  %v3723_v15 = vld [vmem:[#allocation2 + $0x30] sm:$0xff]  ;;  %v3726_v17 = vld [vmem:[#allocation2 + $0x40] sm:$0xff]  ;;  %v3736_v50 = vld [vmem:[#allocation2 + $0x48] sm:$0xff] }
 0x177   : > { %v1568_v3 = vsel %vm1074_vm6, %v1563_v56, %v1567_v49  ;;  %v1571_v11 = vor.u32 %v1569_v47, %v1567_v49  ;;  %v1174_v12 = vrot.slane %v3701_v55, 1  ;;  %v1591_v13 = vrot.slane %v1589_v0, 1  ;;  %v1488_v18 = vld [vmem:[#allocation2 + $0x50] sm:$0x3]  ;;  %v3748_v46 = vld [vmem:[#allocation2 + $0x38] sm:$0xff] }
 0x178   : > { %1624 = vrot.lane.b32.xlu0 %v1568_v3, %s3359_s9  ;;  %v1110_v10 = vsel %vm1074_vm6, %v1105_v61, %v1109_v52  ;;  %v1102_v8 = vsel %vm1074_vm6, %v1097_v4, %v1101_v51  ;;  %1403 = vmatpush.bf16.msra.mxu2 %v3193_v53  ;;  %v1587_v34 = vor.u32 %v1585_v63, %v1583_v5  ;;  %v1173_v14 = vrot.slane %v3242_v7, 1  ;;  %v1024_v47 = vld [vmem:[#allocation2 + $0x48] sm:$0x1]  ;;  %v2026_v60 = vld [vmem:[#allocation2 + $0x10] sm:$0xc] }
 0x179   : > { %1157 = vrot.lane.b32.xlu2 %v1110_v10, %s3359_s9  ;;  %1155 = vrot.lane.b32.xlu1 %v1102_v8, %s3359_s9  ;;  %v1115_v23 = vshll.u32 %v3709_v2, 16  ;;  %v1579_v16 = vor.u32 %v1577_v6, %v1575_v62  ;;  %vm1192_vm8 = vcmask 523264   ;;  %v1576_v19 = vsel %vm1074_vm6, %v1571_v11, %v1575_v62  ;;  %v3757_v61 = vld [vmem:[#allocation2 + $0x14] sm:$0xf] }
 0x17a   : > { %v1175_v1 = vsel %vm1172_vm7, %v1173_v14, %v1174_v12  ;;  %v1119_v20 = vshrl.u32 %v3709_v2, 16  ;;  %v1111_v21 = vshrl.u32 %v3673_v32, 16  ;;  %v1592_v22 = vsel %vm1074_vm6, %v1587_v34, %v1591_v13 }
 0x17b   : > { %v1117_v24 = vrot.slane %v1115_v23, 1  ;;  %v1123_v25 = vshll.u32 %v3723_v15, 16  ;;  %v1539_v26 = vunpack.c.l.b16 %v1488_v18  ;;  %v1584_v27 = vsel %vm1074_vm6, %v1579_v16, %v1583_v5 }
 0x17c   : > { %1404 = vmatpush.bf16.msra.mxu2 %v3192_v9  ;;  %v1593_v28 = vshrl.u32 %v3695_v48, 16  ;;  %v1597_v33 = vshll.u32 %v3726_v17, 16  ;;  %v1113_v35 = vor.u32 %v1111_v21, %v1109_v52  ;;  %v1605_v40 = vshll.u32 %v3736_v50, 16  ;;  %v3753_v52 = vld [vmem:[#allocation2 + $0x40] sm:$0xff] }
 0x17d   : > { %v1121_v36 = vor.u32 %v1119_v20, %v1117_v24  ;;  %v1125_v38 = vrot.slane %v1123_v25, 1  ;;  %v3745_v39 = vpack.c.b16 %v1539_v26, %v1539_v26  ;;  %v1609_v51 = vshrl.u32 %v3736_v50, 16  ;;  %v3782_v21 = vld [vmem:[#allocation2 + $0x20] sm:$0xff] }
 0x17e   : > { %v1595_v41 = vor.u32 %v1593_v28, %v1591_v13  ;;  %v1599_v45 = vrot.slane %v1597_v33, 1  ;;  %v1118_v49 = vsel %vm1074_vm6, %v1113_v35, %v1117_v24  ;;  %v1601_v53 = vshrl.u32 %v3726_v17, 16  ;;  %v3793_v33 = vld [vmem:[#allocation2 + $0x28] sm:$0xff] }
 0x17f   : > { %2926 = vmatmul.msk.bf16.vlgmr.msra.gmra.mxu2 %vm1192_vm8, %v1175_v1  ;;  %v1126_v54 = vsel %vm1074_vm6, %v1121_v36, %v1125_v38  ;;  %v1607_v56 = vrot.slane %v1605_v40, 1  ;;  %v1613_v58 = vshll.u32 %v3745_v39, 16  ;;  %v1072_v59 = vunpack.c.l.b16 %v1024_v47 }
 0x180   : > { %1626 = vrot.lane.b32.xlu0 %v1576_v19, %s3359_s9  ;;  %v1600_v62 = vsel %vm1074_vm6, %v1595_v41, %v1599_v45  ;;  %v1127_v63 = vshrl.u32 %v3723_v15, 16  ;;  %v1131_v0 = vshll.u32 %v3748_v46, 16  ;;  %v1176_v3 = vrot.slane %v3680_v37, 1 }
 0x181   : > { %1630 = vrot.lane.b32.xlu2 %v1592_v22, %s3359_s9  ;;  %1628 = vrot.lane.b32.xlu1 %v1584_v27, %s3359_s9  ;;  %v1603_v4 = vor.u32 %v1601_v53, %v1599_v45  ;;  %v2066_v5 = vunpack.c.l.b16 %v2026_v60  ;;  %v2067_v6 = vunpack.c.l.b16 %v3757_v61  ;;  %v1611_v10 = vor.u32 %v1609_v51, %v1607_v56 }
 0x182   : > { %v1615_v7 = vrot.slane %v1613_v58, 1  ;;  %v3767_v8 = vpack.c.b16 %v1072_v59, %v1072_v59  ;;  %v1139_v9 = vshll.u32 %v3753_v52, 16  ;;  %v1129_v11 = vor.u32 %v1127_v63, %v1125_v38  ;;  %v3803_v58 = vld [vmem:[#allocation2 + $0x30] sm:$0xff]  ;;  %v3805_v59 = vld [vmem:[#allocation2] sm:$0xff]  }
 0x183   : > { %v1133_v34 = vrot.slane %v1131_v0, 1  ;;  %v1177_v13 = vsel %vm1172_vm7, %v1174_v12, %v1176_v3  ;;  %v1608_v14 = vsel %vm1074_vm6, %v1603_v4, %v1607_v56  ;;  %v1135_v23 = vshrl.u32 %v3748_v46, 16  ;;  %v3785_v12 = vld [vmem:[#allocation2 + $0x18] sm:$0xff] }
 0x184   : > { %v3777_v16 = vpack.c.b16 %v2067_v6, %v2066_v5  ;;  %v1616_v18 = vsel %vm1074_vm6, %v1611_v10, %v1615_v7  ;;  %v1141_v19 = vrot.slane %v1139_v9, 1  ;;  %v1143_v1 = vshrl.u32 %v3753_v52, 16  ;;  %v3812_v10 = vld [vmem:[#allocation2 + $0x38] sm:$0xff] }
 0x185   : > { %v1147_v20 = vshll.u32 %v3767_v8, 16  ;;  %v1134_v22 = vsel %vm1074_vm6, %v1129_v11, %v1133_v34  ;;  %v1617_v24 = vshrl.u32 %v3745_v39, 16  ;;  %v1137_v25 = vor.u32 %v1135_v23, %v1133_v34 }
 0x186   : > { %v2101_v26 = vshll.u32 %v3777_v16, 16  ;;  %v1145_v27 = vor.u32 %v1143_v1, %v1141_v19  ;;  %v2114_v35 = vshll.u32 %v3782_v21, 16  ;;  %v2106_v36 = vshll.u32 %v3785_v12, 16  ;;  %v3821_v1 = vld [vmem:[#allocation2 + $0xc] sm:$0xf] }
 0x187   : > { %v1149_v28 = vrot.slane %v1147_v20, 1  ;;  %v1619_v38 = vor.u32 %v1617_v24, %v1615_v7  ;;  %v1142_v40 = vsel %vm1074_vm6, %v1137_v25, %v1141_v19  ;;  %v2099_v41 = vshrl.u32 %v3777_v16, 16  ;;  %v1469_v19 = vld [vmem:[#allocation2 + $0x8] sm:$0xe]  ;;  %v3191_v25 = vld [vmem:[%s4465_s3 + $0x38] sm:$0xff] }
 0x188   : > { %1159 = vrot.lane.b32.xlu0 %v1118_v49, %s3359_s9  ;;  %v2103_v45 = vrot.slane %v2101_v26, 1  ;;  %v2116_v49 = vrot.slane %v2114_v35, 1  ;;  %v2118_v51 = vshrl.u32 %v3782_v21, 16  ;;  %v2122_v53 = vshll.u32 %v3793_v33, 16  ;;  %3243 = vmatpush.bf16.msra.mxu1 %v3191_v25 }
 0x189   : > { %1161 = vrot.lane.b32.xlu2 %v1126_v54, %s3359_s9  ;;  %1632 = vrot.lane.b32.xlu1 %v1600_v62, %s3359_s9  ;;  %v1150_v47 = vsel %vm1074_vm6, %v1145_v27, %v1149_v28  ;;  %v2108_v54 = vrot.slane %v2106_v36, 1  ;;  %v2110_v56 = vshrl.u32 %v3785_v12, 16  ;;  %v1178_v60 = vrot.slane %v3671_v31, 1  ;;  %v3832_v27 = vld [vmem:[#allocation2 + $0x40] sm:$0xff] }
 0x18a   : > { %v2104_v62 = vor.u32 %v2103_v45, %v2099_v41  ;;  %v2120_v63 = vor.u32 %v2118_v51, %v2116_v49  ;;  %v2124_v0 = vrot.slane %v2122_v53, 1  ;;  %v1078_v4 = vshll.u32 %v3805_v59, 16  ;;  %1343 = vmatpush.bf16.msrb.mxu0 %v3191_v25  ;;  %v3188_v25 = vld [vmem:[%s4465_s3 + $0x20] sm:$0xff] }
 0x18b   : > { %v2112_v5 = vor.u32 %v2110_v56, %v2108_v54  ;;  %v2130_v7 = vshll.u32 %v3803_v58, 16  ;;  %v1179_v9 = vsel %vm1172_vm7, %v1176_v3, %v1178_v60  ;;  %v1076_v34 = vshrl.u32 %v3805_v59, 16 }
 0x18c   : > { %v2109_v11 = vsel %vm1074_vm6, %v2104_v62, %v2108_v54  ;;  %v1080_v23 = vrot.slane %v1078_v4, 1  ;;  %v2134_v24 = vshrl.u32 %v3803_v58, 16  ;;  %v2138_v3 = vshll.u32 %v3812_v10, 16  ;;  %v3846_v62 = vld [vmem:[#allocation2 + $0x10] sm:$0xff] }
 0x18d   : > { %v2117_v20 = vsel %vm1074_vm6, %v2112_v5, %v2116_v49  ;;  %v1509_v28 = vunpack.c.l.b16 %v1469_v19  ;;  %v1510_v35 = vunpack.c.l.b16 %v3821_v1  ;;  %v2146_v49 = vshll.u32 %v3832_v27, 16 }
 0x18e   : > { %v1081_v36 = vor.u32 %v1080_v23, %v1076_v34  ;;  %v2140_v41 = vrot.slane %v2138_v3, 1  ;;  %v1087_v56 = vshrl.u32 %v3701_v55, 16  ;;  %v1553_v19 = vshrl.u32 %v3846_v62, 16 }
 0x18f   : > { %2927 = vmatmul.msk.bf16.gmra.mxu2 %vm1192_vm8, %v1177_v13  ;;  %v2126_v13 = vshrl.u32 %v3793_v33, 16  ;;  %v3841_v51 = vpack.c.b16 %v1510_v35, %v1509_v28  ;;  %v3851_v4 = vrot.slane %v2146_v49, 1  ;;  %v1182_v28 = vrot.slane %v3709_v2, 1  ;;  %v3185_v49 = vld [vmem:[%s4465_s3 + $0x8] sm:$0xff] }
 0x190   : > { %1634 = vrot.lane.b32.xlu0 %v1608_v14, %s3359_s9  ;;  %v2125_v14 = vsel %vm1074_vm6, %v2120_v63, %v2124_v0  ;;  %v1180_v63 = vrot.slane %v3673_v32, 1  ;;  %vm2275_vm9 = vcmask 1045504  }
 0x191   : > { %1636 = vrot.lane.b32.xlu2 %v1616_v18, %s3359_s9  ;;  %1163 = vrot.lane.b32.xlu1 %v1134_v22, %s3359_s9  ;;  %v1083_v18 = vshll.u32 %v3701_v55, 16  ;;  %v2132_v22 = vrot.slane %v2130_v7, 1  ;;  %v2128_v26 = vor.u32 %v2126_v13, %v2124_v0  ;;  %v1544_v5 = vshll.u32 %v3841_v51, 16 }
 0x192   : > { %v1542_v13 = vshrl.u32 %v3841_v51, 16 }
 0x193   : > { %v2133_v45 = vsel %vm1074_vm6, %v2128_v26, %v2132_v22 }
 0x198   : > { %1165 = vrot.lane.b32.xlu0 %v1142_v40, %s3359_s9  ;;  %v2136_v40 = vor.u32 %v2134_v24, %v2132_v22  ;;  %v3211_v24 = vld [vmem:[%s4465_s3 + $0x98] sm:$0xff] }
 0x199   : > { %1167 = vrot.lane.b32.xlu2 %v1150_v47, %s3359_s9  ;;  %1638 = vrot.lane.b32.xlu1 %v1619_v38, %s3359_s9  ;;  %v1085_v38 = vrot.slane %v1083_v18, 1  ;;  %v2142_v47 = vshrl.u32 %v3812_v10, 16 }
 0x19a   : > { %v2141_v54 = vsel %vm1074_vm6, %v2136_v40, %v2140_v41  ;;  %3251 = vmatpush.bf16.msra.mxu3 %v3211_v24  ;;  %v3187_v40 = vld [vmem:[%s4465_s3 + $0x18] sm:$0xff] }
 0x19b   : > { %v1086_v53 = vsel %vm1074_vm6, %v1081_v36, %v1085_v38  ;;  %v2144_v0 = vor.u32 %v2142_v47, %v2140_v41  ;;  %v1089_v7 = vor.u32 %v1087_v56, %v1085_v38  ;;  %v3210_v36 = vld [vmem:[%s4465_s3 + $0x90] sm:$0xff]  ;;  %v1183_v38 = vsel %vm1172_vm7, %v1180_v63, %v1182_v28  ;;  %v3209_v41 = vld [vmem:[%s4465_s3 + $0x88] sm:$0xff]  ;;  %v3208_v47 = vld [vmem:[%s4465_s3 + $0x80] sm:$0xff] }
 0x19c   : > { %v1184_v56 = vrot.slane %v3723_v15, 1 }
 0x19d   : > { %v2149_v34 = vsel %vm1074_vm6, %v2144_v0, %v3851_v4  ;;  %v1094_v23 = vsel %vm1074_vm6, %v1089_v7, %v3704_v57  ;;  %v3189_v57 = vld [vmem:[%s4465_s3 + $0x28] sm:$0xff] }
 0x19e   : > { %3252 = vmatpush.bf16.msra.mxu3 %v3210_v36  ;;  %v1185_v0 = vsel %vm1172_vm7, %v1182_v28, %v1184_v56  ;;  %v3230_v28 = vld [vmem:[%s4465_s3 + $0xf0] sm:$0xff] }
 0x19f   : > { %2928 = vmatmul.msk.bf16.gmra.mxu2 %vm1192_vm8, %v1179_v9  ;;  %v1549_v9 = vshll.u32 %v3846_v62, 16 }
 0x1a0   : > { %2177 = vrot.lane.b32.xlu0 %v2109_v11, %s3359_s9  ;;  %v1181_v11 = vsel %vm1172_vm7, %v1178_v60, %v1180_v63  ;;  %v3190_v60 = vld [vmem:[%s4465_s3 + $0x30] sm:$0xff] }
 0x1a1   : > { %2181 = vrot.lane.b32.xlu2 %v2125_v14, %s3359_s9  ;;  %2179 = vrot.lane.b32.xlu1 %v2117_v20, %s3359_s9  ;;  %v1546_v14 = vrot.slane %v1544_v5, 1  ;;  %v1551_v18 = vrot.slane %v1549_v9, 1  ;;  %v3206_v63 = vld [vmem:[%s4465_s3 + $0x70] sm:$0xff]  ;;  %v3205_v5 = vld [vmem:[%s4465_s3 + $0x68] sm:$0xff] }
 0x1a2   : > { %3244 = vmatpush.bf16.msra.mxu1 %v3190_v60  ;;  %1344 = vmatpush.bf16.msrb.mxu0 %v3190_v60  ;;  %v3204_v9 = vld [vmem:[%s4465_s3 + $0x60] sm:$0xff]  ;;  %v3947_v60 = vld [vmem:[%s4465_s3 + $0xa8] sm:$0xff] }
 0x1a3   : > { %v1547_v20 = vor.u32 %v1546_v14, %v1542_v13  ;;  %v1555_v22 = vor.u32 %v1553_v19, %v1551_v18  ;;  %3253 = vmatpush.bf16.msra.mxu3 %v3209_v41 }
 0x1a5   : > { %v1552_v3 = vsel %vm1074_vm6, %v1547_v20, %v1551_v18  ;;  %v1560_v26 = vsel %vm1074_vm6, %v1555_v22, %v3690_v44  ;;  %v3894_v44 = vld [vmem:[%s4465_s3 + $0xb8] sm:$0xff]  ;;  %v3214_v18 = vld [vmem:[%s4465_s3 + $0xb0] sm:$0xff]  ;;  %v1188_v20 = vrot.slane %v3753_v52, 1 }
 0x1a6   : > { %3245 = vmatpush.bf16.msra.mxu1 %v3189_v57  ;;  %1345 = vmatpush.bf16.msrb.mxu0 %v3189_v57 }
 0x1a7   : > { %3259 = vmatpush.bf16.msrb.mxu2 %v3894_v44  ;;  %3254 = vmatpush.bf16.msra.mxu3 %v3208_v47 }
 0x1a8   : > { %2183 = vrot.lane.b32.xlu0 %v2133_v45, %s3359_s9  ;;  %v3186_v45 = vld [vmem:[%s4465_s3 + $0x10] sm:$0xff] }
 0x1a9   : > { %1151 = vrot.lane.b32.xlu2 %v1086_v53, %s3359_s9  ;;  %2185 = vrot.lane.b32.xlu1 %v2141_v54, %s3359_s9  ;;  %v3207_v53 = vld [vmem:[%s4465_s3 + $0x78] sm:$0xff]  ;;  %v3184_v54 = vld [vmem:[%s4465_s3] sm:$0xff] }
 0x1aa   : > { %3246 = vmatpush.bf16.msra.mxu1 %v3188_v25  ;;  %1346 = vmatpush.bf16.msrb.mxu0 %v3188_v25 }
 0x1ab   : > { %3255 = vmatpush.bf16.msra.mxu3 %v3207_v53  ;;  %3260 = vmatpush.bf16.msrb.mxu2 %v3214_v18 }
 0x1ae   : > { %3247 = vmatpush.bf16.msra.mxu1 %v3187_v40  ;;  %1347 = vmatpush.bf16.msrb.mxu0 %v3187_v40 }
 0x1af   : > { %2929 = vmatmul.msk.bf16.gmra.mxu2 %vm1192_vm8, %v1181_v11  ;;  %3256 = vmatpush.bf16.msra.mxu3 %v3206_v63  ;;  %v3235_v11 = vld [vmem:[%s4465_s3 + $0x118] sm:$0xff] }
 0x1b0   : > { %2187 = vrot.lane.b32.xlu0 %v2149_v34, %s3359_s9  ;;  %v1186_v34 = vrot.slane %v3748_v46, 1  ;;  %3261 = vmatpush.bf16.msrb.mxu2 %v3947_v60 }
 0x1b1   : > { %1153 = vrot.lane.b32.xlu1 %v1094_v23, %s3359_s9  ;;  %v3231_v23 = vld [vmem:[%s4465_s3 + $0xf8] sm:$0xff] }
 0x1b2   : > { %3248 = vmatpush.bf16.msra.mxu1 %v3186_v45  ;;  %1348 = vmatpush.bf16.msrb.mxu0 %v3186_v45  ;;  %v1187_v14 = vsel %vm1172_vm7, %v1184_v56, %v1186_v34  ;;  %v1189_v25 = vsel %vm1172_vm7, %v1186_v34, %v1188_v20  ;;  %v1190_v56 = vrot.slane %v3767_v8, 1  ;;  %v1644_v8 = vrot.slane %v3846_v62, 1 }
 0x1b3   : > { %3257 = vmatpush.bf16.msra.mxu3 %v3205_v5 }
 0x1b6   : > { %3249 = vmatpush.bf16.msra.mxu1 %v3185_v49  ;;  %1349 = vmatpush.bf16.msrb.mxu0 %v3185_v49 }
 0x1b7   : > { %3258 = vmatpush.bf16.msra.mxu3 %v3204_v9 }
 0x1b8   : > { %1620 = vrot.lane.b32.xlu0 %v1552_v3, %s3359_s9 }
 0x1b9   : > { %1622 = vrot.lane.b32.xlu1 %v1560_v26, %s3359_s9  ;;  %v3212_v26 = vld [vmem:[%s4465_s3 + $0xa0] sm:$0xff] }
 0x1ba   : > { %3250 = vmatpush.bf16.msra.mxu1 %v3184_v54  ;;  %1350 = vmatpush.bf16.msrb.mxu0 %v3184_v54  ;;  %v3229_v54 = vld [vmem:[%s4465_s3 + $0xe8] sm:$0xff] }
 0x1bb   : > { %2480 = vmatpush.bf16.msrb.mxu3 %v3235_v11  ;;  %3262 = vmatpush.bf16.msrb.mxu2 %v3212_v26  ;;  %v1191_v11 = vsel %vm1172_vm7, %v1188_v20, %v1190_v56  ;;  %v1650_v56 = vrot.slane %v3686_v42, 1 }
 0x1be   : > { %1864 = vmatpush.bf16.msra.mxu0 %v3211_v24  ;;  %2422 = vmatpush.bf16.msrb.mxu1 %v3231_v23 }
 0x1bf   : > { %2930 = vmatmul.msk.bf16.gmra.mxu2 %vm1192_vm8, %v1183_v38 }
 0x1c2   : > { %1865 = vmatpush.bf16.msra.mxu0 %v3210_v36  ;;  %2423 = vmatpush.bf16.msrb.mxu1 %v3230_v28 }
 0x1c6   : > { %1866 = vmatpush.bf16.msra.mxu0 %v3209_v41  ;;  %2424 = vmatpush.bf16.msrb.mxu1 %v3229_v54 }
 0x1ca   : > { %1867 = vmatpush.bf16.msra.mxu0 %v3208_v47 }
 0x1ce   : > { %1868 = vmatpush.bf16.msra.mxu0 %v3207_v53  ;;  %v3234_v53 = vld [vmem:[%s4465_s3 + $0x110] sm:$0xff] }
 0x1cf   : > { %2931 = vmatmul.msk.bf16.gmra.mxu2 %vm1192_vm8, %v1185_v0  ;;  %2481 = vmatpush.bf16.msrb.mxu3 %v3234_v53 }
 0x1d2   : > { %1869 = vmatpush.bf16.msra.mxu0 %v3206_v63 }
 0x1d3   : > { %v1158_v7 = vpop.permute.xlu2 %1157 }
 0x1d6   : > { %1870 = vmatpush.bf16.msra.mxu0 %v3205_v5  ;;  %v1203_v5 = vsel %vm1192_vm8, %v3671_v31, %v1158_v7 }
 0x1da   : > { %1871 = vmatpush.bf16.msra.mxu0 %v3204_v9 }
 0x1db   : > { %v3932_v13 = vpop.permute.xlu2 %1630 }
 0x1df   : > { %2932 = vmatmul.msk.bf16.gmra.mxu2 %vm1192_vm8, %v1187_v14 }
 0x1e3   : > { %v3942_v19 = vpop.permute.xlu2 %1161 }
 0x1ea   : > { %v1625_v22 = vpop.permute.xlu0 %1624 }
 0x1eb   : > { %v3951_v57 = vpop.permute.xlu2 %1636  ;;  %v1156_v24 = vpop.permute.xlu1 %1155  ;;  %v3965_v36 = vsel %vm1192_vm8, %v3667_v29, %v1625_v22  ;;  %v1646_v22 = vrot.slane %v3667_v29, 1 }
 0x1ec   : > { %v1200_v3 = vsel %vm1192_vm8, %v3680_v37, %v1156_v24  ;;  %v1724_v41 = vrot.slane %v3965_v36, 1  ;;  %v1648_v24 = vrot.slane %v3669_v30, 1 }
 0x1ed   : > { %1361 = vmatmul.bf16.vlgmr.msra.gmra.mxu1 %v1200_v3  ;;  %v4005_v28 = vsel %vm1172_vm7, %v1644_v8, %v1646_v22 }
 0x1ee   : > { %v1649_v29 = vsel %vm1172_vm7, %v1646_v22, %v1648_v24 }
 0x1ef   : > { %2933 = vmatmul.msk.bf16.gmra.mxu2 %vm1192_vm8, %v1189_v25 }
 0x1f2   : > { %v1627_v37 = vpop.permute.xlu0 %1626 }
 0x1f3   : > { %v1669_v38 = vsel %vm1192_vm8, %v3669_v30, %v1627_v37  ;;  %v3969_v40 = vpop.permute.xlu2 %1167  ;;  %v1629_v47 = vpop.permute.xlu1 %1628  ;;  %v3228_v30 = vld [vmem:[%s4465_s3 + $0xe0] sm:$0xff]  ;;  %v1726_v37 = vrot.slane %v1649_v29, 1 }
 0x1f4   : > { %v1728_v45 = vrot.slane %v1669_v38, 1  ;;  %v1671_v34 = vsel %vm1192_vm8, %v3686_v42, %v1629_v47  ;;  %2425 = vmatpush.bf16.msrb.mxu1 %v3228_v30 }
 0x1f5   : > { %v1732_v14 = vrot.slane %v1671_v34, 1  ;;  %v1651_v34 = vsel %vm1172_vm7, %v1648_v24, %v1650_v56 }
 0x1f6   : > { %v1729_v49 = vsel %vm1172_vm7, %v1724_v41, %v1728_v45 }
 0x1f7   : > { %1882 = vmatmul.bf16.vlgmr.msra.gmra.mxu3 %v1729_v49  ;;  %v1733_v25 = vsel %vm1172_vm7, %v1728_v45, %v1732_v14 }
 0x1fa   : > { %v1160_v63 = vpop.permute.xlu0 %1159 }
 0x1fb   : > { %v3982_v0 = vpop.permute.xlu2 %2181  ;;  %v1633_v9 = vpop.permute.xlu1 %1632  ;;  %v1206_v47 = vsel %vm1192_vm8, %v3673_v32, %v1160_v63 }
 0x1fc   : > { %v1675_v29 = vsel %vm1192_vm8, %v3695_v48, %v1633_v9  ;;  %v3226_v9 = vld [vmem:[%s4465_s3 + $0xd0] sm:$0xff] }
 0x1fd   : > { %1366 = vmatmul.bf16.gmra.mxu1 %v1203_v5 }
 0x1ff   : > { %2934 = vmatmul.msk.bf16.gmra.mxu2 %vm1192_vm8, %v1191_v11  ;;  %v1487_v11 = vld [vmem:[#allocation2 + $0x50] sm:$0x1] }
 0x200   : > { %v1527_v22 = vunpack.c.l.b16 %v1487_v11 }
 0x202   : > { %v3990_v23 = vpop.permute.xlu0 %1634  ;;  %v3995_v31 = vpop.f32.mrf.mxu2 }
 0x203   : > { %v1152_v3 = vpop.permute.xlu2 %1151  ;;  %v3997_v7 = vpop.permute.xlu1 %1163 }
 0x204   : > { %v1194_v20 = vsel %vm1192_vm8, %v3805_v59, %v1152_v3  ;;  %v1722_v59 = vrot.slane %v4005_v28, 1  ;;  %v1730_v3 = vrot.slane %v1651_v34, 1  ;;  %v2201_v28 = vrot.slane %v3785_v12, 1 }
 0x205   : > { %1351 = vmatmul.bf16.vlgmr.msrb.gmra.mxu0 %v1194_v20 }
 0x206   : > { %1922 = vmatpush.bf16.msrb.mxu0 %v3894_v44  ;;  %v1727_v53 = vsel %vm1172_vm7, %v1722_v59, %v1726_v37  ;;  %v3233_v44 = vld [vmem:[%s4465_s3 + $0x108] sm:$0xff]  ;;  %v1731_v24 = vsel %vm1172_vm7, %v1726_v37, %v1730_v3 }
 0x207   : > { %1887 = vmatmul.bf16.gmra.mxu3 %v1733_v25 }
 0x208   : > { %2482 = vmatpush.bf16.msrb.mxu3 %v3233_v44  ;;  %v1652_v44 = vrot.slane %v3688_v43, 1 }
 0x20a   : > { %v4013_v38 = vpop.permute.xlu0 %1165  ;;  %1923 = vmatpush.bf16.msrb.mxu0 %v3214_v18  ;;  %v4015_v45 = vpop.f32.mrf.mxu2  ;;  %v1673_v18 = vsel %vm1192_vm8, %v3688_v43, %v3932_v13  ;;  %v3227_v13 = vld [vmem:[%s4465_s3 + $0xd8] sm:$0xff] }
 0x20b   : > { %v1639_v49 = vpop.permute.xlu1 %1638  ;;  %v1736_v32 = vrot.slane %v1673_v18, 1  ;;  %2426 = vmatpush.bf16.msrb.mxu1 %v3227_v13 }
 0x20d   : > { %1371 = vmatmul.bf16.gmra.mxu1 %v1206_v47  ;;  %v1740_v47 = vrot.slane %v1675_v29, 1 }
 0x20e   : > { %1924 = vmatpush.bf16.msrb.mxu0 %v3947_v60  ;;  %v1737_v60 = vsel %vm1172_vm7, %v1732_v14, %v1736_v32  ;;  %v1537_v14 = vpack.c.b16 %v1527_v22, %v1527_v22 }
 0x20f   : > { %3040 = vmatmul.msk.bf16.vlgmr.msrb.gmra.mxu2 %vm1192_vm8, %v1727_v53  ;;  %2427 = vmatpush.bf16.msrb.mxu1 %v3226_v9  ;;  %v1741_v43 = vsel %vm1172_vm7, %v1736_v32, %v1740_v47  ;;  %v1212_v32 = vsel %vm1192_vm8, %v3723_v15, %v3997_v7 }
 0x210   : > { %v1682_v30 = vsel %vm1192_vm8, %v1537_v14, %v1639_v49 }
 0x211   : > { %v1752_v37 = vrot.slane %v1682_v30, 1 }
 0x212   : > { %v4030_v54 = vpop.permute.xlu0 %2177  ;;  %1925 = vmatpush.bf16.msrb.mxu0 %v3212_v26  ;;  %v4033_v63 = vpop.f32.mrf.mxu2  ;;  %v1209_v26 = vsel %vm1192_vm8, %v3709_v2, %v3942_v19  ;;  %v4062_v2 = vsel %vm1192_vm8, %v3736_v50, %v3951_v57  ;;  %v1653_v57 = vsel %vm1172_vm7, %v1650_v56, %v1652_v44  ;;  %v3232_v56 = vld [vmem:[%s4465_s3 + $0x100] sm:$0xff] }
 0x213   : > { %v4035_v5 = vpop.permute.xlu1 %2179  ;;  %v1748_v11 = vrot.slane %v4062_v2, 1  ;;  %v1734_v13 = vrot.slane %v1653_v57, 1  ;;  %2483 = vmatpush.bf16.msrb.mxu3 %v3232_v56 }
 0x215   : > { %v4079_v34 = vsel %vm1172_vm7, %v1748_v11, %v1752_v37  ;;  %v1735_v37 = vsel %vm1172_vm7, %v1730_v3, %v1734_v13 }
 0x217   : > { %1892 = vmatmul.bf16.gmra.mxu3 %v1737_v60  ;;  %v4074_v60 = vld [vmem:[#allocation2 + $0x48] sm:$0xff] }
 0x21a   : > { %v4042_v20 = vpop.permute.xlu0 %2183  ;;  %v4044_v42 = vpop.f32.mrf.mxu2 }
 0x21b   : > { %v4049_v25 = vpop.permute.xlu1 %2185 }
 0x21d   : > { %1376 = vmatmul.bf16.gmra.mxu1 %v1209_v26  ;;  %v2154_v26 = vshll.u32 %v4074_v60, 16 }
 0x21f   : > { %3041 = vmatmul.msk.bf16.gmra.mxu2 %vm1192_vm8, %v1731_v24  ;;  %v2156_v9 = vrot.slane %v2154_v26, 1  ;;  %v1654_v26 = vrot.slane %v3695_v48, 1  ;;  %v2220_v48 = vsel %vm1192_vm8, %v3777_v16, %v4030_v54  ;;  %v2158_v16 = vshrl.u32 %v4074_v60, 16 }
 0x222   : > { %v4056_v53 = vpop.permute.xlu0 %2187  ;;  %v4064_v19 = vpop.f32.mrf.mxu2 }
 0x223   : > { %v1154_v18 = vpop.permute.xlu1 %1153 }
 0x224   : > { %v1197_v49 = vsel %vm1192_vm8, %v3701_v55, %v1154_v18  ;;  %v2150_v55 = vshrl.u32 %v3832_v27, 16  ;;  %v2045_v18 = vld [vmem:[#allocation2 + $0x58] sm:$0x7] }
 0x225   : > { %1356 = vmatmul.bf16.gmra.mxu0 %v1197_v49  ;;  %v1677_v49 = vsel %vm1192_vm8, %v3726_v17, %v3990_v23 }
 0x226   : > { %v2152_v30 = vor.u32 %v2150_v55, %v3851_v4  ;;  %v3225_v4 = vld [vmem:[%s4465_s3 + $0xc8] sm:$0xff] }
 0x227   : > { %1897 = vmatmul.bf16.gmra.mxu3 %v1741_v43  ;;  %v4101_v43 = vld [vmem:[#allocation2 + $0x50] sm:$0xff]  ;;  %2428 = vmatpush.bf16.msrb.mxu1 %v3225_v4 }
 0x228   : > { %v2157_v7 = vsel %vm1074_vm6, %v2152_v30, %v2156_v9  ;;  %v2162_v23 = vshll.u32 %v4101_v43, 16  ;;  %v2166_v56 = vshrl.u32 %v4101_v43, 16 }
 0x229   : > { %2189 = vrot.lane.b32.xlu2 %v2157_v7, %s3359_s9  ;;  %v2222_v7 = vsel %vm1192_vm8, %v3785_v12, %v4035_v5  ;;  %v2276_v5 = vrot.slane %v2220_v48, 2  ;;  %v1656_v48 = vrot.slane %v3726_v17, 1 }
 0x22a   : > { %v1621_v22 = vpop.permute.xlu0 %1620  ;;  %v4083_v14 = vpop.f32.mrf.mxu2  ;;  %v2277_v4 = vrot.slane %v2222_v7, 2 }
 0x22b   : > { %v1623_v24 = vpop.permute.xlu1 %1622  ;;  %v1663_v29 = vsel %vm1192_vm8, %v3841_v51, %v1621_v22  ;;  %v2096_v51 = vunpack.c.l.b16 %v2045_v18  ;;  %v1744_v22 = vrot.slane %v1677_v49, 1 }
 0x22c   : > { %v1665_v15 = vsel %vm1192_vm8, %v3846_v62, %v1623_v24  ;;  %v1718_v57 = vrot.slane %v1663_v29, 1  ;;  %v2226_v62 = vsel %vm1192_vm8, %v3793_v33, %v4042_v20 }
 0x22d   : > { %1381 = vmatmul.bf16.gmra.mxu1 %v1212_v32  ;;  %v4108_v3 = vpack.c.b16 %v2096_v51, %v2096_v51  ;;  %v1719_v55 = vrot.slane %v1665_v15, 1  ;;  %v2164_v32 = vrot.slane %v2162_v23, 1  ;;  %v1745_v49 = vsel %vm1172_vm7, %v1740_v47, %v1744_v22 }
 0x22e   : > { %v1655_v15 = vsel %vm1172_vm7, %v1652_v44, %v1654_v26  ;;  %v1215_v47 = vsel %vm1192_vm8, %v3748_v46, %v4013_v38  ;;  %v2278_v44 = vsel %vm2275_vm9, %v2276_v5, %v2277_v4  ;;  %v1749_v17 = vsel %vm1172_vm7, %v1744_v22, %v1748_v11  ;;  %v2046_v22 = vld [vmem:[#allocation2 + $0x10] sm:$0x8] }
 0x22f   : > { %3042 = vmatmul.msk.bf16.gmra.mxu2 %vm1192_vm8, %v1735_v37  ;;  %v2170_v24 = vshll.u32 %v4108_v3, 16  ;;  %v1720_v30 = vsel %vm1172_vm7, %v1718_v57, %v1719_v55  ;;  %v2168_v37 = vor.u32 %v2166_v56, %v2164_v32  ;;  %v3224_v57 = vld [vmem:[%s4465_s3 + $0xc0] sm:$0xff]  ;;  %v1738_v23 = vrot.slane %v1655_v15, 1 }
 0x230   : > { %2429 = vmatpush.bf16.msrb.mxu1 %v3224_v57  ;;  %v2160_v56 = vor.u32 %v2158_v16, %v2156_v9  ;;  %v2174_v46 = vshrl.u32 %v4108_v3, 16  ;;  %v1657_v15 = vsel %vm1172_vm7, %v1654_v26, %v1656_v48  ;;  %v2198_v26 = vunpack.c.l.b16 %v2046_v22 }
 0x231   : > { %v2172_v18 = vrot.slane %v2170_v24, 1  ;;  %v1739_v24 = vsel %vm1172_vm7, %v1734_v13, %v1738_v23  ;;  %v1725_v13 = vsel %vm1172_vm7, %v1719_v55, %v1724_v41  ;;  %v1742_v36 = vrot.slane %v1657_v15, 1 }
 0x232   : > { %v4114_v29 = vpop.f32.mrf.mxu2  ;;  %v1218_v41 = vsel %vm1192_vm8, %v3753_v52, %v3969_v40  ;;  %v2199_v40 = vpack.c.b16 %v2067_v6, %v2198_v26 }
 0x233   : > { %v2173_v51 = vsel %vm1074_vm6, %v2168_v37, %v2172_v18  ;;  %v2165_v37 = vsel %vm1074_vm6, %v2160_v56, %v2164_v32  ;;  %v2176_v9 = vor.u32 %v2174_v46, %v2172_v18  ;;  %v2224_v32 = vsel %vm1192_vm8, %v3782_v21, %v3982_v0 }
 0x234   : > { %2193 = vrot.lane.b32.xlu0 %v2173_v51, %s3359_s9  ;;  %2191 = vrot.lane.b32.xlu2 %v2165_v37, %s3359_s9  ;;  %v1743_v2 = vsel %vm1172_vm7, %v1738_v23, %v1742_v36  ;;  %v1658_v18 = vrot.slane %v3736_v50, 1  ;;  %v2286_v50 = vrot.slane %v2226_v62, 2  ;;  %v2200_v5 = vrot.slane %v2199_v40, 1 }
 0x235   : > { %1872 = vmatmul.bf16.vlgmr.msra.gmra.mxu0 %v1720_v30  ;;  %v1489_v30 = vld [vmem:[#allocation2 + $0x8] sm:$0xc]  ;;  %2195 = vrot.lane.b32.xlu1 %v2176_v9, %s3359_s9  ;;  %v1660_v56 = vrot.slane %v3745_v39, 1 }
 0x236   : > { %v1641_v7 = vunpack.c.l.b16 %v1489_v30  ;;  %v2202_v61 = vsel %vm1172_vm7, %v2200_v5, %v2201_v28 }
 0x237   : > { %1902 = vmatmul.bf16.gmra.mxu3 %v1745_v49  ;;  %v1661_v30 = vsel %vm1172_vm7, %v1658_v18, %v1660_v56 }
 0x238   : > { %v1642_v38 = vpack.c.b16 %v1510_v35, %v1641_v7  ;;  %v2282_v35 = vrot.slane %v2224_v32, 2  ;;  %v2205_v7 = vrot.slane %v3793_v33, 1 }
 0x23a   : > { %v4131_v54 = vpop.f32.mrf.mxu2  ;;  %v1643_v1 = vrot.slane %v1642_v38, 1  ;;  %v2283_v11 = vsel %vm2275_vm9, %v2277_v4, %v2282_v35  ;;  %v2287_v16 = vsel %vm2275_vm9, %v2282_v35, %v2286_v50  ;;  %v1754_v35 = vrot.slane %v1660_v56, 1 }
 0x23c   : > { %v1645_v0 = vsel %vm1172_vm7, %v1643_v1, %v1644_v8  ;;  %v1659_v8 = vsel %vm1172_vm7, %v1656_v48, %v1658_v18 }
 0x23d   : > { %1386 = vmatmul.bf16.gmra.mxu1 %v1215_v47  ;;  %v1721_v55 = vrot.slane %v1645_v0, 1  ;;  %v1746_v4 = vrot.slane %v1659_v8, 1  ;;  %v2209_v8 = vrot.slane %v3812_v10, 1 }
 0x23f   : > { %3043 = vmatmul.msk.bf16.gmra.mxu2 %vm1192_vm8, %v1739_v24  ;;  %v1723_v52 = vsel %vm1172_vm7, %v1721_v55, %v1722_v59  ;;  %v2203_v59 = vrot.slane %v3782_v21, 1  ;;  %v1747_v20 = vsel %vm1172_vm7, %v1742_v36, %v1746_v4  ;;  %v2228_v24 = vsel %vm1192_vm8, %v3803_v58, %v4049_v25 }
 0x240   : > { %v2290_v37 = vrot.slane %v2228_v24, 2  ;;  %v2207_v36 = vrot.slane %v3803_v58, 1 }
 0x241   : > { %v2204_v6 = vsel %vm1172_vm7, %v2201_v28, %v2203_v59 }
 0x242   : > { %v4142_v49 = vpop.f32.mrf.mxu2  ;;  %v2280_v47 = vrot.slane %v2204_v6, 2  ;;  %v2291_v9 = vsel %vm2275_vm9, %v2286_v50, %v2290_v37 }
 0x245   : > { %1877 = vmatmul.bf16.gmra.mxu0 %v1725_v13  ;;  %v2206_v13 = vsel %vm1172_vm7, %v2203_v59, %v2205_v7  ;;  %v2210_v59 = vsel %vm1172_vm7, %v2207_v36, %v2209_v8 }
 0x246   : > { %v2284_v25 = vrot.slane %v2206_v13, 2 }
 0x247   : > { %1907 = vmatmul.bf16.gmra.mxu3 %v1749_v17 }
 0x248   : > { %v2285_v15 = vsel %vm2275_vm9, %v2280_v47, %v2284_v25 }
 0x24a   : > { %v4158_v51 = vpop.f32.mrf.mxu2 }
 0x24d   : > { %1391 = vmatmul.bf16.gmra.mxu1 %v1218_v41 }
 0x24f   : > { %3044 = vmatmul.msk.bf16.gmra.mxu2 %vm1192_vm8, %v1743_v2 }
 0x252   : > { %v4170_v57 = vpop.f32.mrf.mxu2 }
 0x255   : > { %3039 = vmatmul.msk.bf16.vlgmr.msrb.gmra.mxu0 %vm1192_vm8, %v1723_v52 }
 0x257   : > { %1912 = vmatmul.bf16.gmra.mxu3 %v4079_v34  ;;  %v2279_v34 = vrot.slane %v2202_v61, 2 }
 0x259   : > { %v2281_v21 = vsel %vm2275_vm9, %v2279_v34, %v2280_v47 }
 0x25a   : > { %v4185_v23 = vpop.f32.mrf.mxu2 }
 0x25d   : > { %2430 = vmatmul.bf16.vlgmr.msrb.gmra.mxu1 %v2278_v44  ;;  %v1750_v44 = vrot.slane %v1661_v30, 1 }
 0x25f   : > { %3045 = vmatmul.msk.bf16.gmra.mxu2 %vm1192_vm8, %v1747_v20  ;;  %v1751_v38 = vsel %vm1172_vm7, %v1746_v4, %v1750_v44  ;;  %v2292_v20 = vrot.slane %v2210_v59, 2 }
 0x262   : > { %v4193_v12 = vpop.f32.mrf.mxu2 }
 0x267   : > { %3152 = vmatmul.msk.bf16.vlgmr.msrb.gmra.mxu3 %vm1192_vm8, %v2281_v21 }
 0x26a   : > { %v1362_v48 = vpop.f32.mrf.mxu1  ;;  %v4202_v46 = vpop.f32.mrf.mxu2 }
 0x26b   : > { %v1417_v39 = vadd.f32 %v4064_v19, %v1362_v48  ;;  %v4217_v19 = vsel %vm1192_vm8, %v3812_v10, %v4056_v53  ;;  %v2208_v53 = vsel %vm1172_vm7, %v2205_v7, %v2207_v36 }
 0x26c   : > { %v2294_v1 = vrot.slane %v4217_v19, 2  ;;  %v2288_v58 = vrot.slane %v2208_v53, 2 }
 0x26d   : > { %1455 = vst.msk [vmem:[#allocation3 + $0x20] sm:$0xff] %vm1192_vm8, %v1417_v39  ;;  %2435 = vmatmul.bf16.gmra.mxu1 %v2283_v11  ;;  %v1755_v11 = vsel %vm1172_vm7, %v1750_v44, %v1754_v35 }
 0x26e   : > { %v2295_v22 = vsel %vm2275_vm9, %v2290_v37, %v2294_v1  ;;  %v2289_v40 = vsel %vm2275_vm9, %v2284_v25, %v2288_v58 }
 0x26f   : > { %3046 = vmatmul.msk.bf16.gmra.mxu2 %vm1192_vm8, %v1751_v38 }
 0x272   : > { %v1364_v32 = vpop.f32.mrf.mxu1  ;;  %v4210_v17 = vpop.f32.mrf.mxu2 }
 0x273   : > { %v1419_v33 = vadd.f32 %v4083_v14, %v1364_v32 }
 0x274   : > { %v1976_v25 = vld [vmem:[#allocation3 + $0x20] sm:$0xff] }
 0x275   : > { %1456 = vst.msk [vmem:[#allocation3 + $0x28] sm:$0xff] %vm1192_vm8, %v1419_v33 }
 0x277   : > { %3153 = vmatmul.msk.bf16.gmra.mxu3 %vm1192_vm8, %v2285_v15 }
 0x27a   : > { %v1883_v41 = vpop.f32.mrf.mxu3  ;;  %v1367_v0 = vpop.f32.mrf.mxu1 }
 0x27b   : > { %v4223_v2 = vpop.f32.mrf.mxu2  ;;  %v1422_v14 = vadd.f32 %v4114_v29, %v1367_v0 }
 0x27c   : > { %v1977_v53 = vld [vmem:[#allocation3 + $0x28] sm:$0xff] }
 0x27d   : > { %1457 = vst.msk [vmem:[#allocation3 + $0x30] sm:$0xff] %vm1192_vm8, %v1422_v14  ;;  %2440 = vmatmul.bf16.gmra.mxu1 %v2287_v16  ;;  %v2293_v16 = vsel %vm2275_vm9, %v2288_v58, %v2292_v20 }
 0x27f   : > { %3047 = vmatmul.msk.bf16.gmra.mxu2 %vm1192_vm8, %v1755_v11 }
 0x282   : > { %v1352_v55 = vpop.f32.mrf.mxu0  ;;  %v1885_v26 = vpop.f32.mrf.mxu3 }
 0x283   : > { %v1407_v18 = vadd.f32 %v3995_v31, %v1352_v55  ;;  %v1369_v52 = vpop.f32.mrf.mxu1  ;;  %v4234_v29 = vpop.f32.mrf.mxu2 }
 0x284   : > { %v1424_v62 = vadd.f32 %v4131_v54, %v1369_v52  ;;  %v2190_v30 = vpop.permute.xlu2 %2189 }
 0x285   : > { %1451 = vst.msk [vmem:[#allocation3] sm:$0xff] %vm1192_vm8, %v1407_v18 }
 0x286   : > { %1458 = vst.msk [vmem:[#allocation3 + $0x38] sm:$0xff] %vm1192_vm8, %v1424_v62 }
 0x287   : > { %3154 = vmatmul.msk.bf16.gmra.mxu3 %vm1192_vm8, %v2289_v40  ;;  %v1978_v40 = vld [vmem:[#allocation3 + $0x30] sm:$0xff] }
 0x28a   : > { %v1354_v50 = vpop.f32.mrf.mxu0  ;;  %v4242_v4 = vpop.f32.mrf.mxu3 }
 0x28b   : > { %v1409_v31 = vadd.f32 %v4015_v45, %v1354_v50  ;;  %v1372_v5 = vpop.f32.mrf.mxu1  ;;  %v4245_v28 = vpop.f32.mrf.mxu2 }
 0x28c   : > { %v1427_v54 = vadd.f32 %v4142_v49, %v1372_v5  ;;  %v2211_v49 = vrot.slane %v3832_v27, 1 }
 0x28d   : > { %1452 = vst.msk [vmem:[#allocation3 + $0x8] sm:$0xff] %vm1192_vm8, %v1409_v31  ;;  %2445 = vmatmul.bf16.gmra.mxu1 %v2291_v9  ;;  %v2215_v31 = vrot.slane %v4101_v43, 1 }
 0x28e   : > { %1459 = vst.msk [vmem:[#allocation3 + $0x40] sm:$0xff] %vm1192_vm8, %v1427_v54  ;;  %v2212_v24 = vsel %vm1172_vm7, %v2209_v8, %v2211_v49  ;;  %v2192_v19 = vpop.permute.xlu2 %2191 }
 0x28f   : > { %v2234_v52 = vsel %vm1192_vm8, %v4074_v60, %v2192_v19 }
 0x290   : > { %v2302_v50 = vrot.slane %v2234_v52, 2 }
 0x292   : > { %v4251_v61 = vpop.f32.mrf.mxu3 }
 0x293   : > { %v1374_v10 = vpop.f32.mrf.mxu1  ;;  %v4253_v6 = vpop.f32.mrf.mxu2 }
 0x294   : > { %v1429_v45 = vadd.f32 %v4158_v51, %v1374_v10  ;;  %v2296_v51 = vrot.slane %v2212_v24, 2 }
 0x296   : > { %1460 = vst.msk [vmem:[#allocation3 + $0x48] sm:$0xff] %vm1192_vm8, %v1429_v45  ;;  %v2297_v13 = vsel %vm2275_vm9, %v2292_v20, %v2296_v51  ;;  %v1979_v45 = vld [vmem:[#allocation3 + $0x38] sm:$0xff] }
 0x297   : > { %3155 = vmatmul.msk.bf16.gmra.mxu3 %vm1192_vm8, %v2293_v16 }
 0x29a   : > { %v4260_v34 = vpop.f32.mrf.mxu3 }
 0x29b   : > { %v1377_v47 = vpop.f32.mrf.mxu1  ;;  %v4262_v56 = vpop.f32.mrf.mxu2 }
 0x29c   : > { %v1432_v21 = vadd.f32 %v4170_v57, %v1377_v47  ;;  %v2232_v57 = vsel %vm1192_vm8, %v3832_v27, %v2190_v30 }
 0x29d   : > { %2450 = vmatmul.bf16.gmra.mxu1 %v2295_v22  ;;  %v2298_v33 = vrot.slane %v2232_v57, 2 }
 0x29e   : > { %1461 = vst.msk [vmem:[#allocation3 + $0x50] sm:$0xff] %vm1192_vm8, %v1432_v21 }
 0x29f   : > { %v2299_v27 = vsel %vm2275_vm9, %v2294_v1, %v2298_v33 }
 0x2a2   : > { %v4267_v37 = vpop.f32.mrf.mxu3  ;;  %v1357_v44 = vpop.f32.mrf.mxu0 }
 0x2a3   : > { %v1379_v7 = vpop.f32.mrf.mxu1  ;;  %v1412_v48 = vadd.f32 %v4033_v63, %v1357_v44  ;;  %v1937_v38 = vpop.f32.mrf.mxu2  ;;  %v2213_v63 = vrot.slane %v4074_v60, 1  ;;  %v2303_v60 = vsel %vm2275_vm9, %v2298_v33, %v2302_v50 }
 0x2a4   : > { %v1434_v39 = vadd.f32 %v4185_v23, %v1379_v7  ;;  %v1938_v9 = vadd.f32 %v1937_v38, %v1883_v41 }
 0x2a5   : > { %1453 = vst.msk [vmem:[#allocation3 + $0x10] sm:$0xff] %vm1192_vm8, %v1412_v48  ;;  %v2214_v11 = vsel %vm1172_vm7, %v2211_v49, %v2213_v63  ;;  %v2216_v10 = vsel %vm1172_vm7, %v2213_v63, %v2215_v31 }
 0x2a6   : > { %1462 = vst.msk [vmem:[#allocation3 + $0x58] sm:$0xff] %vm1192_vm8, %v1434_v39  ;;  %v1994_v32 = vadd.f32 %v1976_v25, %v1938_v9  ;;  %v2300_v58 = vrot.slane %v2214_v11, 2  ;;  %v2304_v49 = vrot.slane %v2216_v10, 2  ;;  %v2194_v47 = vpop.permute.xlu0 %2193 }
 0x2a7   : > { %3156 = vmatmul.msk.bf16.gmra.mxu3 %vm1192_vm8, %v2297_v13  ;;  %v2236_v44 = vsel %vm1192_vm8, %v4101_v43, %v2194_v47  ;;  %v1980_v13 = vld [vmem:[#allocation3 + $0x40] sm:$0xff]  ;;  %v2044_v43 = vld [vmem:[#allocation2 + $0x58] sm:$0x3] }
 0x2a8   : > { %2012 = vst.msk [vmem:[#allocation3 + $0x20] sm:$0xff] %vm1192_vm8, %v1994_v32  ;;  %v2301_v18 = vsel %vm2275_vm9, %v2296_v51, %v2300_v58  ;;  %v2305_v7 = vsel %vm2275_vm9, %v2300_v58, %v2304_v49  ;;  %v2306_v9 = vrot.slane %v2236_v44, 2 }
 0x2aa   : > { %v4279_v23 = vpop.f32.mrf.mxu3  ;;  %v1359_v15 = vpop.f32.mrf.mxu0 }
 0x2ab   : > { %v1382_v35 = vpop.f32.mrf.mxu1  ;;  %v1414_v36 = vadd.f32 %v4044_v42, %v1359_v15  ;;  %v1939_v0 = vpop.f32.mrf.mxu2 }
 0x2ac   : > { %v1437_v41 = vadd.f32 %v4193_v12, %v1382_v35  ;;  %v1940_v14 = vadd.f32 %v1939_v0, %v1885_v26  ;;  %v1974_v48 = vld [vmem:[#allocation3 + $0x10] sm:$0xff]  ;;  %v2084_v35 = vunpack.c.l.b16 %v2044_v43  ;;  %v1981_v0 = vld [vmem:[#allocation3 + $0x48] sm:$0xff] }
 0x2ad   : > { %1454 = vst.msk [vmem:[#allocation3 + $0x18] sm:$0xff] %vm1192_vm8, %v1414_v36  ;;  %2455 = vmatmul.bf16.gmra.mxu1 %v2299_v27  ;;  %v1983_v10 = vld [vmem:[#allocation3 + $0x58] sm:$0xff] }
 0x2ae   : > { %1463 = vst.msk [vmem:[#allocation3 + $0x60] sm:$0xff] %vm1192_vm8, %v1437_v41  ;;  %v1995_v22 = vadd.f32 %v1977_v53, %v1940_v14  ;;  %v2094_v53 = vpack.c.b16 %v2084_v35, %v2084_v35 }
 0x2b0   : > { %2013 = vst.msk [vmem:[#allocation3 + $0x28] sm:$0xff] %vm1192_vm8, %v1995_v22 }
 0x2b2   : > { %v4290_v1 = vpop.f32.mrf.mxu3  ;;  %v4292_v55 = vpop.f32.mrf.mxu0 }
 0x2b3   : > { %v1384_v42 = vpop.f32.mrf.mxu1  ;;  %v1942_v26 = vpop.f32.mrf.mxu2 }
 0x2b4   : > { %v1439_v12 = vadd.f32 %v4202_v46, %v1384_v42  ;;  %v1943_v62 = vadd.f32 %v1942_v26, %v4242_v4  ;;  %v1975_v27 = vld [vmem:[#allocation3 + $0x18] sm:$0xff] }
 0x2b6   : > { %1464 = vst.msk [vmem:[#allocation3 + $0x68] sm:$0xff] %vm1192_vm8, %v1439_v12  ;;  %v1996_v8 = vadd.f32 %v1978_v40, %v1943_v62  ;;  %v1982_v40 = vld [vmem:[#allocation3 + $0x50] sm:$0xff] }
 0x2b7   : > { %3157 = vmatmul.msk.bf16.gmra.mxu3 %vm1192_vm8, %v2301_v18  ;;  %v1972_v18 = vld [vmem:[#allocation3] sm:$0xff] }
 0x2b8   : > { %2014 = vst.msk [vmem:[#allocation3 + $0x30] sm:$0xff] %vm1192_vm8, %v1996_v8 }
 0x2ba   : > { %v4303_v46 = vpop.f32.mrf.mxu3  ;;  %v4305_v54 = vpop.f32.mrf.mxu0 }
 0x2bb   : > { %v1387_v5 = vpop.f32.mrf.mxu1  ;;  %v1944_v59 = vpop.f32.mrf.mxu2 }
 0x2bc   : > { %v1442_v4 = vadd.f32 %v4210_v17, %v1387_v5  ;;  %v1945_v20 = vadd.f32 %v1944_v59, %v4251_v61 }
 0x2bd   : > { %2460 = vmatmul.bf16.gmra.mxu1 %v2303_v60 }
 0x2be   : > { %1465 = vst.msk [vmem:[#allocation3 + $0x70] sm:$0xff] %vm1192_vm8, %v1442_v4  ;;  %v1997_v16 = vadd.f32 %v1979_v45, %v1945_v20  ;;  %v1973_v4 = vld [vmem:[#allocation3 + $0x8] sm:$0xff] }
 0x2c0   : > { %2015 = vst.msk [vmem:[#allocation3 + $0x38] sm:$0xff] %vm1192_vm8, %v1997_v16 }
 0x2c2   : > { %v4313_v21 = vpop.f32.mrf.mxu3  ;;  %v1878_v51 = vpop.f32.mrf.mxu0 }
 0x2c3   : > { %v1389_v24 = vpop.f32.mrf.mxu1  ;;  %v1933_v30 = vadd.f32 %v4253_v6, %v1878_v51  ;;  %v1947_v61 = vpop.f32.mrf.mxu2 }
 0x2c4   : > { %v1444_v17 = vadd.f32 %v4223_v2, %v1389_v24  ;;  %v1948_v39 = vadd.f32 %v1947_v61, %v4260_v34  ;;  %v2217_v2 = vrot.slane %v4108_v3, 1  ;;  %v2307_v34 = vsel %vm2275_vm9, %v2302_v50, %v2306_v9 }
 0x2c5   : > { %v1992_v38 = vadd.f32 %v1974_v48, %v1933_v30 }
 0x2c6   : > { %1466 = vst.msk [vmem:[#allocation3 + $0x78] sm:$0xff] %vm1192_vm8, %v1444_v17  ;;  %v1998_v57 = vadd.f32 %v1980_v13, %v1948_v39  ;;  %v2218_v41 = vsel %vm1172_vm7, %v2215_v31, %v2217_v2  ;;  %v2312_v16 = vrot.slane %v2217_v2, 2  ;;  %v1984_v17 = vld [vmem:[#allocation3 + $0x60] sm:$0xff]  ;;  %v1985_v13 = vld [vmem:[#allocation3 + $0x68] sm:$0xff] }
 0x2c7   : > { %3158 = vmatmul.msk.bf16.gmra.mxu3 %vm1192_vm8, %v2305_v7  ;;  %2010 = vst.msk [vmem:[#allocation3 + $0x10] sm:$0xff] %vm1192_vm8, %v1992_v38  ;;  %v2308_v11 = vrot.slane %v2218_v41, 2 }
 0x2c8   : > { %2016 = vst.msk [vmem:[#allocation3 + $0x40] sm:$0xff] %vm1192_vm8, %v1998_v57 }
 0x2c9   : > { %v2309_v12 = vsel %vm2275_vm9, %v2304_v49, %v2308_v11  ;;  %v2313_v51 = vsel %vm2275_vm9, %v2308_v11, %v2312_v16 }
 0x2ca   : > { %v4326_v6 = vpop.f32.mrf.mxu3  ;;  %v1880_v32 = vpop.f32.mrf.mxu0 }
 0x2cb   : > { %v1392_v25 = vpop.f32.mrf.mxu1  ;;  %v1935_v63 = vadd.f32 %v4262_v56, %v1880_v32  ;;  %v1949_v15 = vpop.f32.mrf.mxu2 }
 0x2cc   : > { %v1447_v33 = vadd.f32 %v4234_v29, %v1392_v25  ;;  %v1950_v36 = vadd.f32 %v1949_v15, %v4267_v37  ;;  %v2196_v29 = vpop.permute.xlu1 %2195 }
 0x2cd   : > { %v1993_v3 = vadd.f32 %v1975_v27, %v1935_v63  ;;  %2465 = vmatmul.bf16.gmra.mxu1 %v2307_v34  ;;  %v2239_v26 = vsel %vm1192_vm8, %v2094_v53, %v2196_v29  ;;  %v1986_v63 = vld [vmem:[#allocation3 + $0x70] sm:$0xff] }
 0x2ce   : > { %1467 = vst.msk [vmem:[#allocation3 + $0x80] sm:$0xff] %vm1192_vm8, %v1447_v33  ;;  %v1999_v14 = vadd.f32 %v1981_v0, %v1950_v36  ;;  %v2310_v50 = vrot.slane %v2239_v26, 2 }
 0x2cf   : > { %2011 = vst.msk [vmem:[#allocation3 + $0x18] sm:$0xff] %vm1192_vm8, %v1993_v3 }
 0x2d0   : > { %2017 = vst.msk [vmem:[#allocation3 + $0x48] sm:$0xff] %vm1192_vm8, %v1999_v14  ;;  %v2311_v5 = vsel %vm2275_vm9, %v2306_v9, %v2310_v50  ;;  %v4366_v9 = vld [vmem:[%s4466_s4] ss:$0 sm:$0xff]  ;;  %v2532_v14 = vld [vmem:[#allocation3 + $0x10] sm:$0xff] }
 0x2d2   : > { %v4336_v56 = vpop.f32.mrf.mxu3  ;;  %v1927_v58 = vpop.f32.mrf.mxu0 }
 0x2d3   : > { %v1394_v22 = vpop.f32.mrf.mxu1  ;;  %v1928_v19 = vadd.f32 %v1927_v58, %v4292_v55  ;;  %v1952_v42 = vpop.f32.mrf.mxu2 }
 0x2d4   : > { %v1449_v37 = vadd.f32 %v4245_v28, %v1394_v22  ;;  %v1953_v52 = vadd.f32 %v1952_v42, %v4279_v23  ;;  %v1987_v22 = vld [vmem:[#allocation3 + $0x78] sm:$0xff] }
 0x2d5   : > { %v1990_v62 = vadd.f32 %v1972_v18, %v1928_v19  ;;  %v1988_v50 = vld [vmem:[#allocation3 + $0x80] sm:$0xff] }
 0x2d6   : > { %1468 = vst.msk [vmem:[#allocation3 + $0x88] sm:$0xff] %vm1192_vm8, %v1449_v37  ;;  %v2000_v8 = vadd.f32 %v1982_v40, %v1953_v52  ;;  %v2533_v52 = vld [vmem:[#allocation3 + $0x18] sm:$0xff] }
 0x2d7   : > { %3159 = vmatmul.msk.bf16.gmra.mxu3 %vm1192_vm8, %v2309_v12  ;;  %2008 = vst.msk [vmem:[#allocation3] sm:$0xff] %vm1192_vm8, %v1990_v62 }
 0x2d8   : > { %2018 = vst.msk [vmem:[#allocation3 + $0x50] sm:$0xff] %vm1192_vm8, %v2000_v8 }
 0x2da   : > { %v4347_v28 = vpop.f32.mrf.mxu3  ;;  %v1929_v55 = vpop.f32.mrf.mxu0 }
 0x2db   : > { %v2431_v31 = vpop.f32.mrf.mxu1  ;;  %v1930_v23 = vadd.f32 %v1929_v55, %v4305_v54  ;;  %v1954_v60 = vpop.f32.mrf.mxu2 }
 0x2dc   : > { %v1955_v59 = vadd.f32 %v1954_v60, %v4290_v1 }
 0x2dd   : > { %v1991_v20 = vadd.f32 %v1973_v4, %v1930_v23  ;;  %2470 = vmatmul.bf16.gmra.mxu1 %v2311_v5 }
 0x2de   : > { %v2001_v45 = vadd.f32 %v1983_v10, %v1955_v59  ;;  %v2530_v7 = vld [vmem:[#allocation3] sm:$0xff] }
 0x2df   : > { %2009 = vst.msk [vmem:[#allocation3 + $0x8] sm:$0xff] %vm1192_vm8, %v1991_v20  ;;  %v2534_v20 = vld [vmem:[#allocation3 + $0x20] sm:$0xff] }
 0x2e0   : > { %2019 = vst.msk [vmem:[#allocation3 + $0x58] sm:$0xff] %vm1192_vm8, %v2001_v45 }
 0x2e2   : > { %v4354_v49 = vpop.f32.mrf.mxu3 }
 0x2e3   : > { %v2433_v47 = vpop.f32.mrf.mxu1  ;;  %v1957_v24 = vpop.f32.mrf.mxu2 }
 0x2e4   : > { %v1958_v54 = vadd.f32 %v1957_v24, %v4303_v46 }
 0x2e6   : > { %v2002_v30 = vadd.f32 %v1984_v17, %v1958_v54  ;;  %v2531_v25 = vld [vmem:[#allocation3 + $0x8] sm:$0xff] }
 0x2e7   : > { %3160 = vmatmul.msk.bf16.gmra.mxu3 %vm1192_vm8, %v2313_v51 }
 0x2e8   : > { %2020 = vst.msk [vmem:[#allocation3 + $0x60] sm:$0xff] %vm1192_vm8, %v2002_v30 }
 0x2ea   : > { %v2485_v1 = vpop.f32.mrf.mxu3 }
 0x2eb   : > { %v2436_v61 = vpop.f32.mrf.mxu1  ;;  %v2486_v44 = vadd.f32 %v2485_v1, %v2431_v31  ;;  %v1959_v48 = vpop.f32.mrf.mxu2 }
 0x2ec   : > { %v1960_v38 = vadd.f32 %v1959_v48, %v4313_v21 }
 0x2ed   : > { %v2548_v39 = vadd.f32 %v2530_v7, %v2486_v44  ;;  %v2535_v44 = vld [vmem:[#allocation3 + $0x28] sm:$0xff] }
 0x2ee   : > { %v2003_v57 = vadd.f32 %v1985_v13, %v1960_v38 }
 0x2ef   : > { %2566 = vst.msk [vmem:[#allocation3] sm:$0xff] %vm1192_vm8, %v2548_v39 }
 0x2f0   : > { %2021 = vst.msk [vmem:[#allocation3 + $0x68] sm:$0xff] %vm1192_vm8, %v2003_v57 }
 0x2f2   : > { %v2487_v46 = vpop.f32.mrf.mxu3 }
 0x2f3   : > { %v2438_v2 = vpop.f32.mrf.mxu1  ;;  %v2488_v43 = vadd.f32 %v2487_v46, %v2433_v47  ;;  %v1962_v32 = vpop.f32.mrf.mxu2  ;;  %v1989_v47 = vld [vmem:[#allocation3 + $0x88] sm:$0xff] }
 0x2f4   : > { %v1963_v21 = vadd.f32 %v1962_v32, %v4326_v6 }
 0x2f5   : > { %v2549_v34 = vadd.f32 %v2531_v25, %v2488_v43 }
 0x2f6   : > { %v2584_v33 = vld [vmem:[#allocation3] sm:$0xff]  ;;  %v2004_v35 = vadd.f32 %v1986_v63, %v1963_v21 }
 0x2f7   : > { %v2606_v15 = vadd.f32 %v4366_v9, %v2584_v33  ;;  %2567 = vst.msk [vmem:[#allocation3 + $0x8] sm:$0xff] %vm1192_vm8, %v2549_v34 }
 0x2f8   : > { %2022 = vst.msk [vmem:[#allocation3 + $0x70] sm:$0xff] %vm1192_vm8, %v2004_v35  ;;  %v2537_v35 = vld [vmem:[#allocation3 + $0x38] sm:$0xff] }
 0x2f9   : > { %v2624_v27 = vmax.f32 %v2606_v15, 0.0 }
 0x2fa   : > { %v2490_v36 = vpop.f32.mrf.mxu3 }
 0x2fb   : > { %v2642_v41 = vpack.c.bf16 %v2624_v27, %v2624_v27  ;;  %v2441_v3 = vpop.f32.mrf.mxu1  ;;  %v2491_v0 = vadd.f32 %v2490_v36, %v2436_v61  ;;  %v1964_v11 = vpop.f32.mrf.mxu2 }
 0x2fc   : > { %v1965_v53 = vadd.f32 %v1964_v11, %v4336_v56 }
 0x2fd   : > { %2660 = vst.msk [vmem:[%s3453_s10] sm:$0xf] %vm938_vm4, %v2642_v41  ;;  %v2550_v6 = vadd.f32 %v2532_v14, %v2491_v0 }
 0x2fe   : > { %v2585_v29 = vld [vmem:[#allocation3 + $0x8] sm:$0xff]  ;;  %v2005_v37 = vadd.f32 %v1987_v22, %v1965_v53  ;;  %v2538_v53 = vld [vmem:[#allocation3 + $0x40] sm:$0xff] }
 0x2ff   : > { %v2607_v58 = vadd.f32 %v4366_v9, %v2585_v29  ;;  %2568 = vst.msk [vmem:[#allocation3 + $0x10] sm:$0xff] %vm1192_vm8, %v2550_v6 }
 0x300   : > { %2023 = vst.msk [vmem:[#allocation3 + $0x78] sm:$0xff] %vm1192_vm8, %v2005_v37 }
 0x301   : > { %v2625_v19 = vmax.f32 %v2607_v58, 0.0 }
 0x302   : > { %v2492_v42 = vpop.f32.mrf.mxu3 }
 0x303   : > { %v2643_v12 = vpack.c.bf16 %v2625_v19, %v2625_v19  ;;  %v2443_v26 = vpop.f32.mrf.mxu1  ;;  %v2493_v18 = vadd.f32 %v2492_v42, %v2438_v2  ;;  %v1967_v62 = vpop.f32.mrf.mxu2  ;;  %v2536_v2 = vld [vmem:[#allocation3 + $0x30] sm:$0xff] }
 0x304   : > { %v1968_v40 = vadd.f32 %v1967_v62, %v4347_v28 }
 0x305   : > { %2661 = vst.msk [vmem:[%s3453_s10 + $0x4] sm:$0xf] %vm938_vm4, %v2643_v12  ;;  %v2551_v56 = vadd.f32 %v2533_v52, %v2493_v18 }
 0x306   : > { %v2586_v8 = vld [vmem:[#allocation3 + $0x10] sm:$0xff]  ;;  %v2006_v31 = vadd.f32 %v1988_v50, %v1968_v40 }
 0x307   : > { %v2608_v55 = vadd.f32 %v4366_v9, %v2586_v8  ;;  %2569 = vst.msk [vmem:[#allocation3 + $0x18] sm:$0xff] %vm1192_vm8, %v2551_v56 }
 0x308   : > { %2024 = vst.msk [vmem:[#allocation3 + $0x80] sm:$0xff] %vm1192_vm8, %v2006_v31  ;;  %v2540_v31 = vld [vmem:[#allocation3 + $0x50] sm:$0xff] }
 0x309   : > { %v2626_v5 = vmax.f32 %v2608_v55, 0.0 }
 0x30a   : > { %v2495_v23 = vpop.f32.mrf.mxu3 }
 0x30b   : > { %v2644_v60 = vpack.c.bf16 %v2626_v5, %v2626_v5  ;;  %v2446_v4 = vpop.f32.mrf.mxu1  ;;  %v2496_v59 = vadd.f32 %v2495_v23, %v2441_v3  ;;  %v1969_v10 = vpop.f32.mrf.mxu2 }
 0x30c   : > { %v1970_v45 = vadd.f32 %v1969_v10, %v4354_v49 }
 0x30d   : > { %2662 = vst.msk [vmem:[%s3453_s10 + $0x8] sm:$0xf] %vm938_vm4, %v2644_v60  ;;  %v2552_v28 = vadd.f32 %v2534_v20, %v2496_v59 }
 0x30e   : > { %v2587_v16 = vld [vmem:[#allocation3 + $0x18] sm:$0xff]  ;;  %v2007_v51 = vadd.f32 %v1989_v47, %v1970_v45 }
 0x30f   : > { %v2609_v24 = vadd.f32 %v4366_v9, %v2587_v16  ;;  %2570 = vst.msk [vmem:[#allocation3 + $0x20] sm:$0xff] %vm1192_vm8, %v2552_v28  ;;  %v2541_v45 = vld [vmem:[#allocation3 + $0x58] sm:$0xff] }
 0x310   : > { %2025 = vst.msk [vmem:[#allocation3 + $0x88] sm:$0xff] %vm1192_vm8, %v2007_v51 }
 0x311   : > { %v2627_v54 = vmax.f32 %v2609_v24, 0.0 }
 0x312   : > { %v2497_v17 = vpop.f32.mrf.mxu3 }
 0x313   : > { %v2645_v30 = vpack.c.bf16 %v2627_v54, %v2627_v54  ;;  %v2448_v1 = vpop.f32.mrf.mxu1  ;;  %v2498_v61 = vadd.f32 %v2497_v17, %v2443_v26  ;;  %v2539_v26 = vld [vmem:[#allocation3 + $0x48] sm:$0xff] }
 0x315   : > { %2663 = vst.msk [vmem:[%s3453_s10 + $0xc] sm:$0xf] %vm938_vm4, %v2645_v30  ;;  %v2553_v7 = vadd.f32 %v2535_v44, %v2498_v61  ;;  %v2542_v61 = vld [vmem:[#allocation3 + $0x60] sm:$0xff] }
 0x316   : > { %v2588_v49 = vld [vmem:[#allocation3 + $0x20] sm:$0xff] }
 0x317   : > { %v2610_v48 = vadd.f32 %v4366_v9, %v2588_v49  ;;  %2571 = vst.msk [vmem:[#allocation3 + $0x28] sm:$0xff] %vm1192_vm8, %v2553_v7 }
 0x319   : > { %v2628_v39 = vmax.f32 %v2610_v48, 0.0 }
 0x31a   : > { %v2500_v38 = vpop.f32.mrf.mxu3 }
 0x31b   : > { %v2646_v13 = vpack.c.bf16 %v2628_v39, %v2628_v39  ;;  %v2451_v57 = vpop.f32.mrf.mxu1  ;;  %v2501_v46 = vadd.f32 %v2500_v38, %v2446_v4 }
 0x31d   : > { %2664 = vst.msk [vmem:[%s3453_s10 + $0x10] sm:$0xf] %vm938_vm4, %v2646_v13  ;;  %v2554_v43 = vadd.f32 %v2536_v2, %v2501_v46  ;;  %v2543_v46 = vld [vmem:[#allocation3 + $0x68] sm:$0xff] }
 0x31e   : > { %v2589_v25 = vld [vmem:[#allocation3 + $0x28] sm:$0xff] }
 0x31f   : > { %v2611_v32 = vadd.f32 %v4366_v9, %v2589_v25  ;;  %2572 = vst.msk [vmem:[#allocation3 + $0x30] sm:$0xff] %vm1192_vm8, %v2554_v43 }
 0x321   : > { %v2629_v34 = vmax.f32 %v2611_v32, 0.0 }
 0x322   : > { %v2502_v21 = vpop.f32.mrf.mxu3 }
 0x323   : > { %v2647_v33 = vpack.c.bf16 %v2629_v34, %v2629_v34  ;;  %v2453_v63 = vpop.f32.mrf.mxu1  ;;  %v2503_v15 = vadd.f32 %v2502_v21, %v2448_v1 }
 0x325   : > { %2665 = vst.msk [vmem:[%s3453_s10 + $0x14] sm:$0xf] %vm938_vm4, %v2647_v33  ;;  %v2555_v27 = vadd.f32 %v2537_v35, %v2503_v15 }
 0x326   : > { %v2590_v36 = vld [vmem:[#allocation3 + $0x30] sm:$0xff] }
 0x327   : > { %v2612_v41 = vadd.f32 %v4366_v9, %v2590_v36  ;;  %2573 = vst.msk [vmem:[#allocation3 + $0x38] sm:$0xff] %vm1192_vm8, %v2555_v27 }
 0x329   : > { %v2630_v3 = vmax.f32 %v2612_v41, 0.0 }
 0x32a   : > { %v2505_v0 = vpop.f32.mrf.mxu3 }
 0x32b   : > { %v2648_v14 = vpack.c.bf16 %v2630_v3, %v2630_v3  ;;  %v2506_v11 = vadd.f32 %v2505_v0, %v2451_v57  ;;  %v2456_v6 = vpop.f32.mrf.mxu1 }
 0x32d   : > { %2666 = vst.msk [vmem:[%s3453_s10 + $0x18] sm:$0xf] %vm938_vm4, %v2648_v14  ;;  %v2556_v29 = vadd.f32 %v2538_v53, %v2506_v11  ;;  %v2545_v11 = vld [vmem:[#allocation3 + $0x78] sm:$0xff] }
 0x32e   : > { %v2591_v22 = vld [vmem:[#allocation3 + $0x38] sm:$0xff] }
 0x32f   : > { %v2613_v58 = vadd.f32 %v4366_v9, %v2591_v22  ;;  %2574 = vst.msk [vmem:[#allocation3 + $0x40] sm:$0xff] %vm1192_vm8, %v2556_v29 }
 0x331   : > { %v2631_v37 = vmax.f32 %v2613_v58, 0.0 }
 0x332   : > { %v2507_v19 = vpop.f32.mrf.mxu3 }
 0x333   : > { %v2649_v42 = vpack.c.bf16 %v2631_v37, %v2631_v37  ;;  %v2508_v12 = vadd.f32 %v2507_v19, %v2453_v63  ;;  %v2458_v62 = vpop.f32.mrf.mxu1  ;;  %v2544_v63 = vld [vmem:[#allocation3 + $0x70] sm:$0xff] }
 0x335   : > { %2667 = vst.msk [vmem:[%s3453_s10 + $0x1c] sm:$0xf] %vm938_vm4, %v2649_v42  ;;  %v2557_v18 = vadd.f32 %v2539_v26, %v2508_v12  ;;  %v2546_v12 = vld [vmem:[#allocation3 + $0x80] sm:$0xff] }
 0x336   : > { %v2592_v52 = vld [vmem:[#allocation3 + $0x40] sm:$0xff] }
 0x337   : > { %v2614_v56 = vadd.f32 %v4366_v9, %v2592_v52  ;;  %2575 = vst.msk [vmem:[#allocation3 + $0x48] sm:$0xff] %vm1192_vm8, %v2557_v18 }
 0x339   : > { %v2632_v40 = vmax.f32 %v2614_v56, 0.0 }
 0x33a   : > { %v2510_v8 = vpop.f32.mrf.mxu3 }
 0x33b   : > { %v2650_v50 = vpack.c.bf16 %v2632_v40, %v2632_v40  ;;  %v2511_v55 = vadd.f32 %v2510_v8, %v2456_v6  ;;  %v2461_v4 = vpop.f32.mrf.mxu1 }
 0x33d   : > { %2668 = vst.msk [vmem:[%s3453_s10 + $0x20] sm:$0xf] %vm938_vm4, %v2650_v50  ;;  %v2558_v5 = vadd.f32 %v2540_v31, %v2511_v55  ;;  %v2547_v55 = vld [vmem:[#allocation3 + $0x88] sm:$0xff] }
 0x33e   : > { %v2593_v23 = vld [vmem:[#allocation3 + $0x48] sm:$0xff] }
 0x33f   : > { %v2615_v60 = vadd.f32 %v4366_v9, %v2593_v23  ;;  %2576 = vst.msk [vmem:[#allocation3 + $0x50] sm:$0xff] %vm1192_vm8, %v2558_v5 }
 0x341   : > { %v2633_v59 = vmax.f32 %v2615_v60, 0.0 }
 0x342   : > { %v2512_v20 = vpop.f32.mrf.mxu3 }
 0x343   : > { %v2651_v10 = vpack.c.bf16 %v2633_v59, %v2633_v59  ;;  %v2513_v28 = vadd.f32 %v2512_v20, %v2458_v62  ;;  %v2463_v54 = vpop.f32.mrf.mxu1 }
 0x345   : > { %2669 = vst.msk [vmem:[%s3453_s10 + $0x24] sm:$0xf] %vm938_vm4, %v2651_v10  ;;  %v2559_v16 = vadd.f32 %v2541_v45, %v2513_v28 }
 0x346   : > { %v2594_v47 = vld [vmem:[#allocation3 + $0x50] sm:$0xff] }
 0x347   : > { %v2616_v24 = vadd.f32 %v4366_v9, %v2594_v47  ;;  %2577 = vst.msk [vmem:[#allocation3 + $0x58] sm:$0xff] %vm1192_vm8, %v2559_v16 }
 0x349   : > { %v2634_v51 = vmax.f32 %v2616_v24, 0.0 }
 0x34a   : > { %v2515_v17 = vpop.f32.mrf.mxu3 }
 0x34b   : > { %v2652_v30 = vpack.c.bf16 %v2634_v51, %v2634_v51  ;;  %v2516_v1 = vadd.f32 %v2515_v17, %v2461_v4  ;;  %v2466_v57 = vpop.f32.mrf.mxu1 }
 0x34d   : > { %2670 = vst.msk [vmem:[%s3453_s10 + $0x28] sm:$0xf] %vm938_vm4, %v2652_v30  ;;  %v2560_v44 = vadd.f32 %v2542_v61, %v2516_v1 }
 0x34e   : > { %v2595_v7 = vld [vmem:[#allocation3 + $0x58] sm:$0xff] }
 0x34f   : > { %v2617_v49 = vadd.f32 %v4366_v9, %v2595_v7  ;;  %2578 = vst.msk [vmem:[#allocation3 + $0x60] sm:$0xff] %vm1192_vm8, %v2560_v44 }
 0x351   : > { %v2635_v48 = vmax.f32 %v2617_v49, 0.0 }
 0x352   : > { %v2517_v39 = vpop.f32.mrf.mxu3 }
 0x353   : > { %v2653_v38 = vpack.c.bf16 %v2635_v48, %v2635_v48  ;;  %v2518_v13 = vadd.f32 %v2517_v39, %v2463_v54  ;;  %v2468_v35 = vpop.f32.mrf.mxu1 }
 0x355   : > { %2671 = vst.msk [vmem:[%s3453_s10 + $0x2c] sm:$0xf] %vm938_vm4, %v2653_v38  ;;  %v2561_v2 = vadd.f32 %v2543_v46, %v2518_v13 }
 0x356   : > { %v2596_v43 = vld [vmem:[#allocation3 + $0x60] sm:$0xff] }
 0x357   : > { %v2618_v25 = vadd.f32 %v4366_v9, %v2596_v43  ;;  %2579 = vst.msk [vmem:[#allocation3 + $0x68] sm:$0xff] %vm1192_vm8, %v2561_v2 }
 0x359   : > { %v2636_v32 = vmax.f32 %v2618_v25, 0.0 }
 0x35a   : > { %v2520_v34 = vpop.f32.mrf.mxu3 }
 0x35b   : > { %v2654_v21 = vpack.c.bf16 %v2636_v32, %v2636_v32  ;;  %v2521_v33 = vadd.f32 %v2520_v34, %v2466_v57  ;;  %v2471_v22 = vpop.f32.mrf.mxu1 }
 0x35d   : > { %2672 = vst.msk [vmem:[%s3453_s10 + $0x30] sm:$0xf] %vm938_vm4, %v2654_v21  ;;  %v2562_v15 = vadd.f32 %v2544_v63, %v2521_v33 }
 0x35e   : > { %v2597_v27 = vld [vmem:[#allocation3 + $0x68] sm:$0xff] }
 0x35f   : > { %v2619_v36 = vadd.f32 %v4366_v9, %v2597_v27  ;;  %2580 = vst.msk [vmem:[#allocation3 + $0x70] sm:$0xff] %vm1192_vm8, %v2562_v15 }
 0x361   : > { %v2637_v41 = vmax.f32 %v2619_v36, 0.0 }
 0x362   : > { %v2522_v3 = vpop.f32.mrf.mxu3 }
 0x363   : > { %v2655_v0 = vpack.c.bf16 %v2637_v41, %v2637_v41  ;;  %v2523_v14 = vadd.f32 %v2522_v3, %v2468_v35  ;;  %v2473_v56 = vpop.f32.mrf.mxu1 }
 0x365   : > { %2673 = vst.msk [vmem:[%s3453_s10 + $0x34] sm:$0xf] %vm938_vm4, %v2655_v0  ;;  %v2563_v6 = vadd.f32 %v2545_v11, %v2523_v14 }
 0x366   : > { %v2598_v53 = vld [vmem:[#allocation3 + $0x70] sm:$0xff] }
 0x367   : > { %v2620_v29 = vadd.f32 %v4366_v9, %v2598_v53  ;;  %2581 = vst.msk [vmem:[#allocation3 + $0x78] sm:$0xff] %vm1192_vm8, %v2563_v6 }
 0x369   : > { %v2638_v58 = vmax.f32 %v2620_v29, 0.0 }
 0x36a   : > { %v2525_v37 = vpop.f32.mrf.mxu3 }
 0x36b   : > { %v2656_v19 = vpack.c.bf16 %v2638_v58, %v2638_v58  ;;  %v2526_v42 = vadd.f32 %v2525_v37, %v2471_v22 }
 0x36d   : > { %2674 = vst.msk [vmem:[%s3453_s10 + $0x38] sm:$0xf] %vm938_vm4, %v2656_v19  ;;  %v2564_v26 = vadd.f32 %v2546_v12, %v2526_v42 }
 0x36e   : > { %v2599_v18 = vld [vmem:[#allocation3 + $0x78] sm:$0xff] }
 0x36f   : > { %v2621_v52 = vadd.f32 %v4366_v9, %v2599_v18  ;;  %2582 = vst.msk [vmem:[#allocation3 + $0x80] sm:$0xff] %vm1192_vm8, %v2564_v26 }
 0x371   : > { %v2639_v62 = vmax.f32 %v2621_v52, 0.0 }
 0x372   : > { %v2527_v40 = vpop.f32.mrf.mxu3 }
 0x373   : > { %v2657_v8 = vpack.c.bf16 %v2639_v62, %v2639_v62  ;;  %v2528_v50 = vadd.f32 %v2527_v40, %v2473_v56 }
 0x375   : > { %2675 = vst.msk [vmem:[%s3453_s10 + $0x3c] sm:$0xf] %vm938_vm4, %v2657_v8  ;;  %v2565_v31 = vadd.f32 %v2547_v55, %v2528_v50 }
 0x376   : > { %v2600_v5 = vld [vmem:[#allocation3 + $0x80] sm:$0xff] }
 0x377   : > { %v2622_v23 = vadd.f32 %v4366_v9, %v2600_v5  ;;  %2583 = vst.msk [vmem:[#allocation3 + $0x88] sm:$0xff] %vm1192_vm8, %v2565_v31 }
 0x379   : > { %v2640_v60 = vmax.f32 %v2622_v23, 0.0 }
 0x37b   : > { %v2658_v4 = vpack.c.bf16 %v2640_v60, %v2640_v60 }
 0x37d   : > { %2676 = vst.msk [vmem:[%s3453_s10 + $0x40] sm:$0xf] %vm938_vm4, %v2658_v4 }
 0x37e   : > { %v2601_v59 = vld [vmem:[#allocation3 + $0x88] sm:$0xff] }
 0x37f   : > { %v2623_v20 = vadd.f32 %v4366_v9, %v2601_v59 }
 0x381   : > { %v2641_v10 = vmax.f32 %v2623_v20, 0.0 }
 0x383   : > { %v2659_v28 = vpack.c.bf16 %v2641_v10, %v2641_v10 }
 0x385   : > { %2677 = vst.msk [vmem:[%s3453_s10 + $0x44] sm:$0xf] %vm938_vm4, %v2659_v28 }
 0x386 PF: > { %s16_s25 = sadd.s32 1, %s3354_s25   ;;  %s4475_s21 = smov %s3346_s23 }
 0x387   : > { %p13_p9 = scmp.ge.s32.totalorder %s16_s25, 6   ;;  %s4476_s22 = smov %s3350_s24 }
 0x388   : > { %s4477_s23 = smov %s4480_s26  ;;  %s4478_s24 = smov %s4484_s27 }
 0x389   :  { %15 = sbr.rel (!%p13_p9) target bundleno = 3 (0x3), region = 84 }

</bundles_post_ra>
